<compile_context>
chip_gen: v7x
topology: tpu7x:2x2x1
jax: 0.10.0
libtpu: 0.0.40
codegen_flags: <defaults>
</compile_context>

<pallas_src>
import jax
import jax.numpy as jnp
from jax.experimental import pallas as pl
from jax.experimental.pallas import tpu as pltpu

IN_F = 10 * 9 * 9        # 810
HID = 64                 # hidden width of fc1/fc2
OUT = 9 ** 3             # 729

# Lane-aligned (padded) sizes.
K_PAD = 896              # 810 -> 7 * 128
H_PAD = 128              # 64  -> 128
G = 9                    # softmax groups (dim=1 of the (B, 9, 9, 9) view)
GROUP = 81               # 9 * 9 valid positions per group
GROUP_PAD = 128          # lane-aligned group width
N_PAD = G * GROUP_PAD    # 1152


def _round_up(a, m):
    return (a + m - 1) // m * m


def fc_ref_kernel(x_ref, w1_ref, b1_ref, w2_ref, b2_ref, w3_ref, b3_ref, o_ref):
    x = x_ref[...]

    # fc1 + ReLU (Dropout(p=0.4) is identity at inference).
    h = jnp.dot(x, w1_ref[...], preferred_element_type=jnp.float32) + b1_ref[...]
    h = jnp.maximum(h, 0.0)

    # fc2 + ReLU (Dropout(p=0.4) is identity at inference).
    h = jnp.dot(h, w2_ref[...], preferred_element_type=jnp.float32) + b2_ref[...]
    h = jnp.maximum(h, 0.0)

    # fc3 (output columns already scattered into 9 lane-aligned 128-wide groups).
    h3 = jnp.dot(h, w3_ref[...], preferred_element_type=jnp.float32) + b3_ref[...]

    # Softmax over dim=1 of the (B, 9, 9, 9) view == softmax across the 9
    # lane-aligned groups at matching lane positions.
    groups = [h3[:, i * GROUP_PAD:(i + 1) * GROUP_PAD] for i in range(G)]
    m = groups[0]
    for g in groups[1:]:
        m = jnp.maximum(m, g)
    exps = [jnp.exp(g - m) for g in groups]
    denom = exps[0]
    for e in exps[1:]:
        denom = denom + e

    # EUP approximate reciprocal + one Newton-Raphson step -> f32-accurate,
    # keeps the divide off the VALU slot.
    inv = pl.reciprocal(denom, approx=True)
    inv = inv * (2.0 - denom * inv)

    # Lane-dense per-group stores (no concatenate, no masked vst).
    for i in range(G):
        o_ref[:, i * GROUP_PAD:(i + 1) * GROUP_PAD] = exps[i] * inv


def fc_ref_forward(x, padded_params, *, tile_m=256):
    """x: (B, 10, 9, 9) float32 -> (B, 9, 9, 9) float32 softmax over dim 1."""
    B = x.shape[0]
    x2d = x.reshape(B, IN_F).astype(jnp.float32)

    # Batch tile size: multiple of 8 sublanes, capped at tile_m.
    tm = min(tile_m, _round_up(B, 8))
    B_pad = _round_up(B, tm)

    # Zero-pad batch and contraction dims once in the wrapper (unmasked loads).
    x_p = jnp.pad(x2d, ((0, B_pad - B), (0, K_PAD - IN_F)))

    w1p, b1p, w2p, b2p, w3p, b3p = padded_params

    out = pl.pallas_call(
        fc_ref_kernel,
        out_shape=jax.ShapeDtypeStruct((B_pad, N_PAD), jnp.float32),
        grid_spec=pltpu.PrefetchScalarGridSpec(
            num_scalar_prefetch=0,
            grid=(B_pad // tm,),
            in_specs=[
                pl.BlockSpec((tm, K_PAD), lambda i: (i, 0)),      # x tile
                pl.BlockSpec((K_PAD, H_PAD), lambda i: (0, 0)),   # W1 (resident)
                pl.BlockSpec((1, H_PAD), lambda i: (0, 0)),       # b1
                pl.BlockSpec((H_PAD, H_PAD), lambda i: (0, 0)),   # W2 (resident)
                pl.BlockSpec((1, H_PAD), lambda i: (0, 0)),       # b2
                pl.BlockSpec((H_PAD, N_PAD), lambda i: (0, 0)),   # W3 (resident)
                pl.BlockSpec((1, N_PAD), lambda i: (0, 0)),       # b3
            ],
            out_specs=pl.BlockSpec((tm, N_PAD), lambda i: (i, 0)),
        ),
        compiler_params=pltpu.CompilerParams(
            dimension_semantics=("parallel",),
        ),
    )(x_p, w1p, b1p, w2p, b2p, w3p, b3p)

    # Strip padding: (B, 9, 128) -> first 81 lanes of each group -> (B, 9, 9, 9).
    out = out[:B].reshape(B, G, GROUP_PAD)[:, :, :GROUP].reshape(B, 9, 9, 9)
    return out


def make_params(key):
    """PyTorch nn.Linear default init: U(-1/sqrt(fan_in), 1/sqrt(fan_in))."""
    ks = jax.random.split(key, 6)

    def lin(kw, kb, fan_in, fan_out):
        bound = 1.0 / jnp.sqrt(fan_in)
        w = jax.random.uniform(kw, (fan_in, fan_out), jnp.float32, -bound, bound)
        b = jax.random.uniform(kb, (fan_out,), jnp.float32, -bound, bound)
        return w, b

    w1, b1 = lin(ks[0], ks[1], IN_F, HID)
    w2, b2 = lin(ks[2], ks[3], HID, HID)
    w3, b3 = lin(ks[4], ks[5], HID, OUT)
    return (w1, b1, w2, b2, w3, b3)


def pad_params(params):
    """Zero-pad weights/biases to lane-aligned shapes; fc3 columns are scattered
    so each of the 9 softmax groups occupies a 128-lane-aligned slice."""
    w1, b1, w2, b2, w3, b3 = params

    w1p = jnp.zeros((K_PAD, H_PAD), jnp.float32).at[:IN_F, :HID].set(w1)
    b1p = jnp.zeros((1, H_PAD), jnp.float32).at[:, :HID].set(b1[None, :])
    w2p = jnp.zeros((H_PAD, H_PAD), jnp.float32).at[:HID, :HID].set(w2)
    b2p = jnp.zeros((1, H_PAD), jnp.float32).at[:, :HID].set(b2[None, :])

    w3_g = w3.reshape(HID, G, GROUP)
    b3_g = b3.reshape(G, GROUP)
    w3p = (jnp.zeros((H_PAD, G, GROUP_PAD), jnp.float32)
           .at[:HID, :, :GROUP].set(w3_g)
           .reshape(H_PAD, N_PAD))
    b3p = (jnp.zeros((1, G, GROUP_PAD), jnp.float32)
           .at[:, :, :GROUP].set(b3_g[None])
           .reshape(1, N_PAD))
    return (w1p, b1p, w2p, b2p, w3p, b3p)


def fc_ref_reference(x, params):
    """Pure-JAX reference matching FC_ref.forward (eval mode)."""
    w1, b1, w2, b2, w3, b3 = params
    B = x.shape[0]
    h = x.reshape(B, IN_F)
    h = jnp.maximum(h @ w1 + b1, 0.0)
    h = jnp.maximum(h @ w2 + b2, 0.0)
    h = (h @ w3 + b3).reshape(B, 9, 9, 9)
    return jax.nn.softmax(h, axis=1)


if __name__ == "__main__":
    key = jax.random.PRNGKey(0)
    kx, kx2, kp = jax.random.split(key, 3)

    params = make_params(kp)
    padded = pad_params(params)

    # Small-batch check.
    x = jax.random.normal(kx, (8, 10, 9, 9), jnp.float32)
    out = jax.block_until_ready(fc_ref_forward(x, padded))
    assert out.shape == (8, 9, 9, 9)
    ref = fc_ref_reference(x, params)
    assert jnp.allclose(out, ref, atol=1e-3, rtol=1e-3), "mismatch vs reference (B=8)"
    assert jnp.allclose(jnp.sum(out, axis=1), 1.0, atol=1e-4)

    # Multi-tile (gridded) check: batch padded to 2 tiles of 256 rows.
    x2 = jax.random.normal(kx2, (260, 10, 9, 9), jnp.float32)
    out2 = jax.block_until_ready(fc_ref_forward(x2, padded))
    assert out2.shape == (260, 9, 9, 9)
    ref2 = fc_ref_reference(x2, params)
    assert jnp.allclose(out2, ref2, atol=1e-3, rtol=1e-3), "mismatch vs reference (B=260)"
    assert jnp.allclose(jnp.sum(out2, axis=1), 1.0, atol=1e-4)

    print("KERNEL_OK")
</pallas_src>

<mosaic_0001>
module attributes {stable_mosaic.version = 11 : i64} {
  func.func @fc_ref_kernel(%arg0: i32, %arg1: memref<8x896xf32, #tpu.memory_space<vmem>>, %arg2: memref<896x128xf32, #tpu.memory_space<vmem>>, %arg3: memref<1x128xf32, #tpu.memory_space<vmem>>, %arg4: memref<128x128xf32, #tpu.memory_space<vmem>>, %arg5: memref<1x128xf32, #tpu.memory_space<vmem>>, %arg6: memref<128x1152xf32, #tpu.memory_space<vmem>>, %arg7: memref<1x1152xf32, #tpu.memory_space<vmem>>, %arg8: memref<8x1152xf32, #tpu.memory_space<vmem>>) attributes {dimension_semantics = [#tpu.dimension_semantics<parallel>], iteration_bounds = array<i64: 1>, scalar_prefetch = 0 : i64, scratch_operands = 0 : i64, tpu.core_type = #tpu.core_type<tc>, window_params = [{transform_indices = @transform_0, window_bounds = array<i64: 8, 896>}, {pipeline_mode = #tpu.pipeline_mode<synchronous>, transform_indices = @transform_1, window_bounds = array<i64: 896, 128>}, {pipeline_mode = #tpu.pipeline_mode<synchronous>, transform_indices = @transform_2, window_bounds = array<i64: 1, 128>}, {pipeline_mode = #tpu.pipeline_mode<synchronous>, transform_indices = @transform_3, window_bounds = array<i64: 128, 128>}, {pipeline_mode = #tpu.pipeline_mode<synchronous>, transform_indices = @transform_4, window_bounds = array<i64: 1, 128>}, {pipeline_mode = #tpu.pipeline_mode<synchronous>, transform_indices = @transform_5, window_bounds = array<i64: 128, 1152>}, {pipeline_mode = #tpu.pipeline_mode<synchronous>, transform_indices = @transform_6, window_bounds = array<i64: 1, 1152>}, {transform_indices = @transform_7, window_bounds = array<i64: 8, 1152>}]} {
    %c0 = arith.constant 0 : index
    %c0_0 = arith.constant 0 : index
    %0 = vector.load %arg1[%c0, %c0_0] : memref<8x896xf32, #tpu.memory_space<vmem>>, vector<8x896xf32>
    %c0_1 = arith.constant 0 : index
    %c0_2 = arith.constant 0 : index
    %1 = vector.load %arg2[%c0_1, %c0_2] : memref<896x128xf32, #tpu.memory_space<vmem>>, vector<896x128xf32>
    %cst = arith.constant dense<0.000000e+00> : vector<8x128xf32>
    %2 = tpu.matmul %0, %1, %cst {dimension_numbers = #tpu.dot_dimension_numbers<[1], [0], [0], [1], [0, 0, 1, 1], [], []>} : vector<8x896xf32>, vector<896x128xf32>, vector<8x128xf32> -> vector<8x128xf32>
    %c0_3 = arith.constant 0 : index
    %c0_4 = arith.constant 0 : index
    %3 = vector.load %arg3[%c0_3, %c0_4] : memref<1x128xf32, #tpu.memory_space<vmem>>, vector<1x128xf32>
    %4 = vector.broadcast %3 : vector<1x128xf32> to vector<8x128xf32>
    %5 = arith.addf %2, %4 : vector<8x128xf32>
    %cst_5 = arith.constant 0.000000e+00 : f32
    %6 = vector.broadcast %cst_5 : f32 to vector<8x128xf32>
    %7 = arith.maximumf %5, %6 : vector<8x128xf32>
    %c0_6 = arith.constant 0 : index
    %c0_7 = arith.constant 0 : index
    %8 = vector.load %arg4[%c0_6, %c0_7] : memref<128x128xf32, #tpu.memory_space<vmem>>, vector<128x128xf32>
    %cst_8 = arith.constant dense<0.000000e+00> : vector<8x128xf32>
    %9 = tpu.matmul %7, %8, %cst_8 {dimension_numbers = #tpu.dot_dimension_numbers<[1], [0], [0], [1], [0, 0, 1, 1], [], []>} : vector<8x128xf32>, vector<128x128xf32>, vector<8x128xf32> -> vector<8x128xf32>
    %c0_9 = arith.constant 0 : index
    %c0_10 = arith.constant 0 : index
    %10 = vector.load %arg5[%c0_9, %c0_10] : memref<1x128xf32, #tpu.memory_space<vmem>>, vector<1x128xf32>
    %11 = vector.broadcast %10 : vector<1x128xf32> to vector<8x128xf32>
    %12 = arith.addf %9, %11 : vector<8x128xf32>
    %cst_11 = arith.constant 0.000000e+00 : f32
    %13 = vector.broadcast %cst_11 : f32 to vector<8x128xf32>
    %14 = arith.maximumf %12, %13 : vector<8x128xf32>
    %c0_12 = arith.constant 0 : index
    %c0_13 = arith.constant 0 : index
    %15 = vector.load %arg6[%c0_12, %c0_13] : memref<128x1152xf32, #tpu.memory_space<vmem>>, vector<128x1152xf32>
    %cst_14 = arith.constant dense<0.000000e+00> : vector<8x1152xf32>
    %16 = tpu.matmul %14, %15, %cst_14 {dimension_numbers = #tpu.dot_dimension_numbers<[1], [0], [0], [1], [0, 0, 1, 1], [], []>} : vector<8x128xf32>, vector<128x1152xf32>, vector<8x1152xf32> -> vector<8x1152xf32>
    %c0_15 = arith.constant 0 : index
    %c0_16 = arith.constant 0 : index
    %17 = vector.load %arg7[%c0_15, %c0_16] : memref<1x1152xf32, #tpu.memory_space<vmem>>, vector<1x1152xf32>
    %18 = vector.broadcast %17 : vector<1x1152xf32> to vector<8x1152xf32>
    %19 = arith.addf %16, %18 : vector<8x1152xf32>
    %20 = vector.extract_strided_slice %19 {offsets = [0, 0], sizes = [8, 128], strides = [1, 1]} : vector<8x1152xf32> to vector<8x128xf32>
    %21 = vector.extract_strided_slice %19 {offsets = [0, 128], sizes = [8, 128], strides = [1, 1]} : vector<8x1152xf32> to vector<8x128xf32>
    %22 = vector.extract_strided_slice %19 {offsets = [0, 256], sizes = [8, 128], strides = [1, 1]} : vector<8x1152xf32> to vector<8x128xf32>
    %23 = vector.extract_strided_slice %19 {offsets = [0, 384], sizes = [8, 128], strides = [1, 1]} : vector<8x1152xf32> to vector<8x128xf32>
    %24 = vector.extract_strided_slice %19 {offsets = [0, 512], sizes = [8, 128], strides = [1, 1]} : vector<8x1152xf32> to vector<8x128xf32>
    %25 = vector.extract_strided_slice %19 {offsets = [0, 640], sizes = [8, 128], strides = [1, 1]} : vector<8x1152xf32> to vector<8x128xf32>
    %26 = vector.extract_strided_slice %19 {offsets = [0, 768], sizes = [8, 128], strides = [1, 1]} : vector<8x1152xf32> to vector<8x128xf32>
    %27 = vector.extract_strided_slice %19 {offsets = [0, 896], sizes = [8, 128], strides = [1, 1]} : vector<8x1152xf32> to vector<8x128xf32>
    %28 = vector.extract_strided_slice %19 {offsets = [0, 1024], sizes = [8, 128], strides = [1, 1]} : vector<8x1152xf32> to vector<8x128xf32>
    %29 = arith.maximumf %20, %21 : vector<8x128xf32>
    %30 = arith.maximumf %29, %22 : vector<8x128xf32>
    %31 = arith.maximumf %30, %23 : vector<8x128xf32>
    %32 = arith.maximumf %31, %24 : vector<8x128xf32>
    %33 = arith.maximumf %32, %25 : vector<8x128xf32>
    %34 = arith.maximumf %33, %26 : vector<8x128xf32>
    %35 = arith.maximumf %34, %27 : vector<8x128xf32>
    %36 = arith.maximumf %35, %28 : vector<8x128xf32>
    %37 = arith.subf %20, %36 : vector<8x128xf32>
    %38 = math.exp %37 : vector<8x128xf32>
    %39 = arith.subf %21, %36 : vector<8x128xf32>
    %40 = math.exp %39 : vector<8x128xf32>
    %41 = arith.subf %22, %36 : vector<8x128xf32>
    %42 = math.exp %41 : vector<8x128xf32>
    %43 = arith.subf %23, %36 : vector<8x128xf32>
    %44 = math.exp %43 : vector<8x128xf32>
    %45 = arith.subf %24, %36 : vector<8x128xf32>
    %46 = math.exp %45 : vector<8x128xf32>
    %47 = arith.subf %25, %36 : vector<8x128xf32>
    %48 = math.exp %47 : vector<8x128xf32>
    %49 = arith.subf %26, %36 : vector<8x128xf32>
    %50 = math.exp %49 : vector<8x128xf32>
    %51 = arith.subf %27, %36 : vector<8x128xf32>
    %52 = math.exp %51 : vector<8x128xf32>
    %53 = arith.subf %28, %36 : vector<8x128xf32>
    %54 = math.exp %53 : vector<8x128xf32>
    %55 = arith.addf %38, %40 : vector<8x128xf32>
    %56 = arith.addf %55, %42 : vector<8x128xf32>
    %57 = arith.addf %56, %44 : vector<8x128xf32>
    %58 = arith.addf %57, %46 : vector<8x128xf32>
    %59 = arith.addf %58, %48 : vector<8x128xf32>
    %60 = arith.addf %59, %50 : vector<8x128xf32>
    %61 = arith.addf %60, %52 : vector<8x128xf32>
    %62 = arith.addf %61, %54 : vector<8x128xf32>
    %63 = tpu.reciprocal %62 {approx = true} : vector<8x128xf32> -> vector<8x128xf32>
    %64 = arith.mulf %62, %63 : vector<8x128xf32>
    %cst_17 = arith.constant 2.000000e+00 : f32
    %65 = vector.broadcast %cst_17 : f32 to vector<8x128xf32>
    %66 = arith.subf %65, %64 : vector<8x128xf32>
    %67 = arith.mulf %63, %66 : vector<8x128xf32>
    %68 = arith.mulf %38, %67 : vector<8x128xf32>
    %c0_18 = arith.constant 0 : index
    %c0_19 = arith.constant 0 : index
    %69 = vector.load %arg8[%c0_18, %c0_19] : memref<8x1152xf32, #tpu.memory_space<vmem>>, vector<8x128xf32>
    tpu.vector_store %arg8[%c0_18, %c0_19], %68 {strides = array<i32>} : memref<8x1152xf32, #tpu.memory_space<vmem>>, vector<8x128xf32>,
    %70 = arith.mulf %40, %67 : vector<8x128xf32>
    %c0_20 = arith.constant 0 : index
    %c128 = arith.constant 128 : index
    %71 = vector.load %arg8[%c0_20, %c128] : memref<8x1152xf32, #tpu.memory_space<vmem>>, vector<8x128xf32>
    tpu.vector_store %arg8[%c0_20, %c128], %70 {strides = array<i32>} : memref<8x1152xf32, #tpu.memory_space<vmem>>, vector<8x128xf32>,
    %72 = arith.mulf %42, %67 : vector<8x128xf32>
    %c0_21 = arith.constant 0 : index
    %c256 = arith.constant 256 : index
    %73 = vector.load %arg8[%c0_21, %c256] : memref<8x1152xf32, #tpu.memory_space<vmem>>, vector<8x128xf32>
    tpu.vector_store %arg8[%c0_21, %c256], %72 {strides = array<i32>} : memref<8x1152xf32, #tpu.memory_space<vmem>>, vector<8x128xf32>,
    %74 = arith.mulf %44, %67 : vector<8x128xf32>
    %c0_22 = arith.constant 0 : index
    %c384 = arith.constant 384 : index
    %75 = vector.load %arg8[%c0_22, %c384] : memref<8x1152xf32, #tpu.memory_space<vmem>>, vector<8x128xf32>
    tpu.vector_store %arg8[%c0_22, %c384], %74 {strides = array<i32>} : memref<8x1152xf32, #tpu.memory_space<vmem>>, vector<8x128xf32>,
    %76 = arith.mulf %46, %67 : vector<8x128xf32>
    %c0_23 = arith.constant 0 : index
    %c512 = arith.constant 512 : index
    %77 = vector.load %arg8[%c0_23, %c512] : memref<8x1152xf32, #tpu.memory_space<vmem>>, vector<8x128xf32>
    tpu.vector_store %arg8[%c0_23, %c512], %76 {strides = array<i32>} : memref<8x1152xf32, #tpu.memory_space<vmem>>, vector<8x128xf32>,
    %78 = arith.mulf %48, %67 : vector<8x128xf32>
    %c0_24 = arith.constant 0 : index
    %c640 = arith.constant 640 : index
    %79 = vector.load %arg8[%c0_24, %c640] : memref<8x1152xf32, #tpu.memory_space<vmem>>, vector<8x128xf32>
    tpu.vector_store %arg8[%c0_24, %c640], %78 {strides = array<i32>} : memref<8x1152xf32, #tpu.memory_space<vmem>>, vector<8x128xf32>,
    %80 = arith.mulf %50, %67 : vector<8x128xf32>
    %c0_25 = arith.constant 0 : index
    %c768 = arith.constant 768 : index
    %81 = vector.load %arg8[%c0_25, %c768] : memref<8x1152xf32, #tpu.memory_space<vmem>>, vector<8x128xf32>
    tpu.vector_store %arg8[%c0_25, %c768], %80 {strides = array<i32>} : memref<8x1152xf32, #tpu.memory_space<vmem>>, vector<8x128xf32>,
    %82 = arith.mulf %52, %67 : vector<8x128xf32>
    %c0_26 = arith.constant 0 : index
    %c896 = arith.constant 896 : index
    %83 = vector.load %arg8[%c0_26, %c896] : memref<8x1152xf32, #tpu.memory_space<vmem>>, vector<8x128xf32>
    tpu.vector_store %arg8[%c0_26, %c896], %82 {strides = array<i32>} : memref<8x1152xf32, #tpu.memory_space<vmem>>, vector<8x128xf32>,
    %84 = arith.mulf %54, %67 : vector<8x128xf32>
    %c0_27 = arith.constant 0 : index
    %c1024 = arith.constant 1024 : index
    %85 = vector.load %arg8[%c0_27, %c1024] : memref<8x1152xf32, #tpu.memory_space<vmem>>, vector<8x128xf32>
    tpu.vector_store %arg8[%c0_27, %c1024], %84 {strides = array<i32>} : memref<8x1152xf32, #tpu.memory_space<vmem>>, vector<8x128xf32>,
    return
  }
  func.func @transform_0(%arg0: i32) -> (i32, i32) {
    %c0_i32 = arith.constant 0 : i32
    %c0_i32_0 = arith.constant 0 : i32
    return %arg0, %c0_i32 : i32, i32
  }
  func.func @transform_1(%arg0: i32) -> (i32, i32) {
    %c0_i32 = arith.constant 0 : i32
    %c0_i32_0 = arith.constant 0 : i32
    %c0_i32_1 = arith.constant 0 : i32
    return %c0_i32, %c0_i32_0 : i32, i32
  }
  func.func @transform_2(%arg0: i32) -> (i32, i32) {
    %c0_i32 = arith.constant 0 : i32
    %c0_i32_0 = arith.constant 0 : i32
    %c0_i32_1 = arith.constant 0 : i32
    return %c0_i32, %c0_i32_0 : i32, i32
  }
  func.func @transform_3(%arg0: i32) -> (i32, i32) {
    %c0_i32 = arith.constant 0 : i32
    %c0_i32_0 = arith.constant 0 : i32
    %c0_i32_1 = arith.constant 0 : i32
    return %c0_i32, %c0_i32_0 : i32, i32
  }
  func.func @transform_4(%arg0: i32) -> (i32, i32) {
    %c0_i32 = arith.constant 0 : i32
    %c0_i32_0 = arith.constant 0 : i32
    %c0_i32_1 = arith.constant 0 : i32
    return %c0_i32, %c0_i32_0 : i32, i32
  }
  func.func @transform_5(%arg0: i32) -> (i32, i32) {
    %c0_i32 = arith.constant 0 : i32
    %c0_i32_0 = arith.constant 0 : i32
    %c0_i32_1 = arith.constant 0 : i32
    return %c0_i32, %c0_i32_0 : i32, i32
  }
  func.func @transform_6(%arg0: i32) -> (i32, i32) {
    %c0_i32 = arith.constant 0 : i32
    %c0_i32_0 = arith.constant 0 : i32
    %c0_i32_1 = arith.constant 0 : i32
    return %c0_i32, %c0_i32_0 : i32, i32
  }
  func.func @transform_7(%arg0: i32) -> (i32, i32) {
    %c0_i32 = arith.constant 0 : i32
    %c0_i32_0 = arith.constant 0 : i32
    return %arg0, %c0_i32 : i32, i32
  }
}

</mosaic_0001>

<bundles_post_ra>
// kernel: tpu_custom_call.1
= control target key start
LH: loop header
LB: loop body
LE: loop exit
PB: predicated region body
PF: predicated region fallthrough
CT: control target
= control target key end

     0   :  { %12 = vsyncpa [#allocation3], 0  ;;  %s2091_s0 = inlined_call_operand.hbm [shape: f32[8,896], index: 0, kind: input, shape index: {}]   ;;  %s2092_s1 = inlined_call_operand.hbm [shape: f32[896,128], index: 1, kind: input, shape index: {}]   ;;  %s2093_s2 = inlined_call_operand.vmem [shape: f32[1,128], index: 2, kind: input, shape index: {}]   ;;  %s2094_s3 = inlined_call_operand.hbm [shape: f32[128,128], index: 3, kind: input, shape index: {}]   ;;  %s2095_s4 = inlined_call_operand.vmem [shape: f32[1,128], index: 4, kind: input, shape index: {}]   ;;  %s2096_s5 = inlined_call_operand.hbm [shape: f32[128,1152], index: 5, kind: input, shape index: {}]   ;;  %s2097_s6 = inlined_call_operand.vmem [shape: f32[1,1152], index: 6, kind: input, shape index: {}]   ;;  %s2098_s7 = inlined_call_operand.hbm [shape: f32[8,1152], index: 7, kind: output, shape index: {}]  }
   0x1   :  { %13 = vsyncpa [#allocation6], 0 }
   0x2   :  { %14 = vsyncpa [#allocation9], 0 }
   0x3   :  { %15 = vsyncpa [#allocation4], 0  ;;  %s1920_s24 = smov [#allocation5]   ;;  %s1802_s28 = scalar_lea.hbm %s2092_s1, 14336 }
   0x4   :  { %s31_s25 = sshll.u32 %s1920_s24, 4  ;;  %p1803_p0 = scmp.ne.s32.totalorder %s2092_s1, %s1802_s28  ;;  %s32_s25 = int_to_ptr.vmem [resolvable:$true] %s31_s25 }
   0x5   :  { %p1806_p1 = scmp.lt.u32.totalorder %s1802_s28, %s2092_s1 }
   0x7   :  { %p1808_p2 = pnand %p1806_p1, %p1803_p0 }
   0x9   :  { %1811 = shalt.err (!%p1808_p2)
}
   0xa   :  { %s1812_s10 = scalar_lea.vmem %s32_s25, 14336  ;;  %p1817_p4 = scmp.lt.s32.totalorder %s32_s25, %s32_s25 }
   0xb   :  { %p1813_p3 = scmp.ne.s32.totalorder %s32_s25, %s1812_s10  ;;  %p1818_p5 = scmp.lt.s32.totalorder %s1812_s10, %s1812_s10 }
   0xd   :  { %p1819_p6 = por %p1818_p5, %p1817_p4 }
   0xf   :  { %p1820_p7 = pnand %p1819_p6, %p1813_p3 }
  0x11   :  { %1823 = shalt.err (!%p1820_p7)
}
  0x12   :  { %s1921_s11 = smov 128   ;;  %s1922_s12 = smov 8  }
  0x13   :  { %37 = dma.hbm_to_vmem [thread:$0]  %s2092_s1, 14336, %s32_s25, [#allocation6], %s1921_s11, %s1921_s11, %s1922_s12  }
  0x14   :  { %s1923_s15 = smov [#allocation2]   ;;  %s1924_s17 = smov [#allocation7]  }
  0x15   :  { %s22_s16 = sshll.u32 %s1923_s15, 4  ;;  %s45_s18 = sshll.u32 %s1924_s17, 4  ;;  %s23_s16 = int_to_ptr.vmem [resolvable:$true] %s22_s16  ;;  %s46_s18 = int_to_ptr.vmem [resolvable:$true] %s45_s18 }
  0x16   :  { %s1824_s21 = scalar_lea.hbm %s2091_s0, 896 }
  0x17   :  { %p1825_p8 = scmp.ne.s32.totalorder %s2091_s0, %s1824_s21  ;;  %p1828_p9 = scmp.lt.u32.totalorder %s1824_s21, %s2091_s0 }
  0x19   :  { %p1830_p10 = pnand %p1828_p9, %p1825_p8 }
  0x1b   :  { %1833 = shalt.err (!%p1830_p10)
}
  0x1c   :  { %s1834_s1 = scalar_lea.vmem %s23_s16, 896  ;;  %p1839_p12 = scmp.lt.s32.totalorder %s23_s16, %s23_s16 }
  0x1d   :  { %p1835_p11 = scmp.ne.s32.totalorder %s23_s16, %s1834_s1  ;;  %p1840_p13 = scmp.lt.s32.totalorder %s1834_s1, %s1834_s1 }
  0x1f   :  { %p1841_p0 = por %p1840_p13, %p1839_p12 }
  0x21   :  { %p1842_p1 = pnand %p1841_p0, %p1835_p11 }
  0x23   :  { %1845 = shalt.err (!%p1842_p1)
}
  0x24   :  { %25 = dma.hbm_to_vmem [thread:$0]  %s2091_s0, 896, %s23_s16, [#allocation3]  }
  0x25   :  { %s1846_s30 = scalar_lea.hbm %s2094_s3, 2048 }
  0x26   :  { %p1847_p2 = scmp.ne.s32.totalorder %s2094_s3, %s1846_s30  ;;  %p1850_p3 = scmp.lt.u32.totalorder %s1846_s30, %s2094_s3 }
  0x28   :  { %p1852_p4 = pnand %p1850_p3, %p1847_p2 }
  0x2a   :  { %1855 = shalt.err (!%p1852_p4)
}
  0x2b   :  { %s1856_s14 = scalar_lea.vmem %s46_s18, 2048  ;;  %p1861_p6 = scmp.lt.s32.totalorder %s46_s18, %s46_s18 }
  0x2c   :  { %p1857_p5 = scmp.ne.s32.totalorder %s46_s18, %s1856_s14  ;;  %p1862_p7 = scmp.lt.s32.totalorder %s1856_s14, %s1856_s14 }
  0x2e   :  { %p1863_p8 = por %p1862_p7, %p1861_p6 }
  0x30   :  { %p1864_p9 = pnand %p1863_p8, %p1857_p5 }
  0x32   :  { %1867 = shalt.err (!%p1864_p9)
}
  0x33   :  { %51 = dma.hbm_to_vmem [thread:$0]  %s2094_s3, 2048, %s46_s18, [#allocation6], %s1921_s11, %s1921_s11, %s1922_s12  }
  0x34   :  { %s1925_s16 = smov [#allocation8]   ;;  %s1868_s21 = scalar_lea.hbm %s2096_s5, 18432 }
  0x35   :  { %s59_s17 = sshll.u32 %s1925_s16, 4  ;;  %p1869_p10 = scmp.ne.s32.totalorder %s2096_s5, %s1868_s21  ;;  %s60_s17 = int_to_ptr.vmem [resolvable:$true] %s59_s17 }
  0x36   :  { %p1872_p11 = scmp.lt.u32.totalorder %s1868_s21, %s2096_s5 }
  0x38   :  { %p1874_p12 = pnand %p1872_p11, %p1869_p10 }
  0x3a   :  { %1877 = shalt.err (!%p1874_p12)
}
  0x3b   :  { %s1878_s1 = scalar_lea.vmem %s60_s17, 18432  ;;  %p1883_p0 = scmp.lt.s32.totalorder %s60_s17, %s60_s17 }
  0x3c   :  { %p1879_p13 = scmp.ne.s32.totalorder %s60_s17, %s1878_s1  ;;  %p1884_p1 = scmp.lt.s32.totalorder %s1878_s1, %s1878_s1 }
  0x3e   :  { %p1885_p2 = por %p1884_p1, %p1883_p0 }
  0x40   :  { %p1886_p3 = pnand %p1885_p2, %p1879_p13 }
  0x42   :  { %1889 = shalt.err (!%p1886_p3)
}
  0x43   :  { %s1926_s3 = smov 1152   ;;  %s1927_s11 = smov 72  }
  0x44   :  { %65 = dma.hbm_to_vmem [thread:$0]  %s2096_s5, 18432, %s60_s17, [#allocation9], %s1926_s3, %s1926_s3, %s1927_s11  }
  0x45   :  { %1912 = dma.done.wait [#allocation3], 896  }
  0x46   :  { %1913 = vsyncadd [#allocation3], 4294966400 }
  0x47   :  { %1914 = dma.done.wait [#allocation6], 16384  }
  0x48   :  { %1915 = vsyncadd [#allocation6], 4294950912 }
  0x49   :  { %1916 = dma.done.wait [#allocation9], 18432  }
  0x4a   :  { %1917 = vsyncadd [#allocation9], 4294948864  ;;  %v103_v0 = vld [vmem:[#allocation5 + $0x80] sm:$0xff]  ;;  %v104_v1 = vld [vmem:[#allocation5 + $0x88] sm:$0xff]  ;;  %vm1929_vm0 = vmmov 0  }
  0x4b   :  { %v87_v2 = vld [vmem:[#allocation5] sm:$0xff]  ;;  %v1474_v3 = vpack.c.bf16 %v104_v1, %v103_v0  ;;  %v88_v4 = vld [vmem:[#allocation5 + $0x8] sm:$0xff]  ;;  %v105_v11 = vld [vmem:[#allocation5 + $0x90] sm:$0xff] }
  0x4c   :  { %v135_v5 = vld [vmem:[#allocation5 + $0x180] sm:$0xff]  ;;  %v136_v6 = vld [vmem:[#allocation5 + $0x188] sm:$0xff]  ;;  %v1476_v7 = vpack.c.bf16 %v88_v4, %v87_v2  ;;  %v106_v13 = vld [vmem:[#allocation5 + $0x98] sm:$0xff] }
  0x4d   :  { %v1506_v8 = vpack.c.bf16 %v136_v6, %v135_v5  ;;  %v119_v9 = vld [vmem:[#allocation5 + $0x100] sm:$0xff]  ;;  %v120_v10 = vld [vmem:[#allocation5 + $0x108] sm:$0xff]  ;;  %1475 = vmatprep.subr.bf16.mxu0 %v1474_v3  ;;  %v89_v14 = vld [vmem:[#allocation5 + $0x10] sm:$0xff]  ;;  %v1478_v16 = vpack.c.bf16 %v106_v13, %v105_v11 }
  0x4e   :  { %v1508_v12 = vpack.c.bf16 %v120_v10, %v119_v9  ;;  %v90_v15 = vld [vmem:[#allocation5 + $0x18] sm:$0xff]  ;;  %1477 = vmatpush3.bf16.msra.mxu0 %v1476_v7  ;;  %v137_v18 = vld [vmem:[#allocation5 + $0x190] sm:$0xff]  ;;  %v107_v23 = vld [vmem:[#allocation5 + $0xa0] sm:$0xff] }
  0x4f   :  { %1507 = vmatprep.subr.bf16.mxu1 %v1506_v8  ;;  %v1480_v17 = vpack.c.bf16 %v90_v15, %v89_v14  ;;  %v138_v19 = vld [vmem:[#allocation5 + $0x198] sm:$0xff]  ;;  %v121_v20 = vld [vmem:[#allocation5 + $0x110] sm:$0xff]  ;;  %v108_v24 = vld [vmem:[#allocation5 + $0xa8] sm:$0xff]  ;;  %1479 = vmatprep.subr.bf16.mxu0 %v1478_v16 }
  0x50   :  { %1509 = vmatpush3.bf16.msra.mxu1 %v1508_v12  ;;  %v1510_v21 = vpack.c.bf16 %v138_v19, %v137_v18  ;;  %v122_v22 = vld [vmem:[#allocation5 + $0x118] sm:$0xff]  ;;  %v1482_v26 = vpack.c.bf16 %v108_v24, %v107_v23  ;;  %v91_v27 = vld [vmem:[#allocation5 + $0x20] sm:$0xff]  ;;  %v92_v28 = vld [vmem:[#allocation5 + $0x28] sm:$0xff] }
  0x51   :  { %v1512_v25 = vpack.c.bf16 %v122_v22, %v121_v20  ;;  %v139_v29 = vld [vmem:[#allocation5 + $0x1a0] sm:$0xff]  ;;  %v140_v30 = vld [vmem:[#allocation5 + $0x1a8] sm:$0xff]  ;;  %v1484_v33 = vpack.c.bf16 %v92_v28, %v91_v27  ;;  %v109_v35 = vld [vmem:[#allocation5 + $0xb0] sm:$0xff] }
  0x52   :  { %1511 = vmatprep.subr.bf16.mxu1 %v1510_v21  ;;  %v123_v31 = vld [vmem:[#allocation5 + $0x120] sm:$0xff]  ;;  %v124_v32 = vld [vmem:[#allocation5 + $0x128] sm:$0xff]  ;;  %1481 = vmatpush3.bf16.msra.mxu0 %v1480_v17  ;;  %v1514_v34 = vpack.c.bf16 %v140_v30, %v139_v29  ;;  %v110_v36 = vld [vmem:[#allocation5 + $0xb8] sm:$0xff] }
  0x53   :  { %v93_v37 = vld [vmem:[#allocation5 + $0x30] sm:$0xff]  ;;  %1483 = vmatprep.subr.bf16.mxu0 %v1482_v26  ;;  %v1516_v38 = vpack.c.bf16 %v124_v32, %v123_v31  ;;  %v1486_v39 = vpack.c.bf16 %v110_v36, %v109_v35  ;;  %v94_v40 = vld [vmem:[#allocation5 + $0x38] sm:$0xff]  ;;  %v111_v46 = vld [vmem:[#allocation5 + $0xc0] sm:$0xff] }
  0x54   :  { %1513 = vmatpush3.bf16.msra.mxu1 %v1512_v25  ;;  %v141_v41 = vld [vmem:[#allocation5 + $0x1b0] sm:$0xff]  ;;  %v142_v42 = vld [vmem:[#allocation5 + $0x1b8] sm:$0xff]  ;;  %v112_v47 = vld [vmem:[#allocation5 + $0xc8] sm:$0xff]  ;;  %v1488_v48 = vpack.c.bf16 %v94_v40, %v93_v37 }
  0x55   :  { %1515 = vmatprep.subr.bf16.mxu1 %v1514_v34  ;;  %v1518_v43 = vpack.c.bf16 %v142_v42, %v141_v41  ;;  %v125_v44 = vld [vmem:[#allocation5 + $0x130] sm:$0xff]  ;;  %v126_v45 = vld [vmem:[#allocation5 + $0x138] sm:$0xff]  ;;  %v143_v49 = vld [vmem:[#allocation5 + $0x1c0] sm:$0xff]  ;;  %v1490_v52 = vpack.c.bf16 %v112_v47, %v111_v46 }
  0x56   :  { %1485 = vmatpush3.bf16.msra.mxu0 %v1484_v33  ;;  %v144_v50 = vld [vmem:[#allocation5 + $0x1c8] sm:$0xff]  ;;  %v1520_v51 = vpack.c.bf16 %v126_v45, %v125_v44  ;;  %v95_v53 = vld [vmem:[#allocation5 + $0x40] sm:$0xff]  ;;  %v113_v58 = vld [vmem:[#allocation5 + $0xd0] sm:$0xff] }
  0x57   :  { %1487 = vmatprep.subr.bf16.mxu0 %v1486_v39  ;;  %v96_v54 = vld [vmem:[#allocation5 + $0x48] sm:$0xff]  ;;  %v127_v55 = vld [vmem:[#allocation5 + $0x140] sm:$0xff]  ;;  %v1522_v56 = vpack.c.bf16 %v144_v50, %v143_v49  ;;  %v114_v59 = vld [vmem:[#allocation5 + $0xd8] sm:$0xff] }
  0x58   :  { %1517 = vmatpush3.bf16.msra.mxu1 %v1516_v38  ;;  %v128_v57 = vld [vmem:[#allocation5 + $0x148] sm:$0xff]  ;;  %v145_v60 = vld [vmem:[#allocation5 + $0x1d0] sm:$0xff]  ;;  %v146_v61 = vld [vmem:[#allocation5 + $0x1d8] sm:$0xff]  ;;  %v1492_v62 = vpack.c.bf16 %v96_v54, %v95_v53  ;;  %v1494_v0 = vpack.c.bf16 %v114_v59, %v113_v58 }
  0x59   :  { %1519 = vmatprep.subr.bf16.mxu1 %v1518_v43  ;;  %v1524_v63 = vpack.c.bf16 %v128_v57, %v127_v55  ;;  %v97_v1 = vld [vmem:[#allocation5 + $0x50] sm:$0xff]  ;;  %v98_v2 = vld [vmem:[#allocation5 + $0x58] sm:$0xff]  ;;  %v1526_v4 = vpack.c.bf16 %v146_v61, %v145_v60  ;;  %v115_v6 = vld [vmem:[#allocation5 + $0xe0] sm:$0xff] }
  0x5a   :  { %1489 = vmatpush3.bf16.msra.mxu0 %v1488_v48  ;;  %v129_v3 = vld [vmem:[#allocation5 + $0x150] sm:$0xff]  ;;  %v130_v5 = vld [vmem:[#allocation5 + $0x158] sm:$0xff]  ;;  %v116_v7 = vld [vmem:[#allocation5 + $0xe8] sm:$0xff]  ;;  %v1496_v10 = vpack.c.bf16 %v98_v2, %v97_v1  ;;  %v1930_v1 = vmov 0.0  }
  0x5b   :  { %1491 = vmatprep.subr.bf16.mxu0 %v1490_v52  ;;  %v147_v8 = vld [vmem:[#allocation5 + $0x1e0] sm:$0xff]  ;;  %v148_v9 = vld [vmem:[#allocation5 + $0x1e8] sm:$0xff]  ;;  %v81_v12 = vld [vmem:[#allocation2 + $0x8] sm:$0xff]  ;;  %v1528_v13 = vpack.c.bf16 %v130_v5, %v129_v3  ;;  %v1498_v14 = vpack.c.bf16 %v116_v7, %v115_v6 }
  0x5c   :  { %1521 = vmatpush3.bf16.msra.mxu1 %v1520_v51  ;;  %v99_v11 = vld [vmem:[#allocation5 + $0x60] sm:$0xff]  ;;  %v100_v15 = vld [vmem:[#allocation5 + $0x68] sm:$0xff]  ;;  %v1530_v18 = vpack.c.bf16 %v148_v9, %v147_v8  ;;  %v117_v19 = vld [vmem:[#allocation5 + $0xf0] sm:$0xff]  ;;  %270 = vmatprep.mubr.f32.mxu0 %v81_v12  ;;  %v1928_v51 = vmov 0.0|0.0  }
  0x5d   :  { %1523 = vmatprep.subr.bf16.mxu1 %v1522_v56  ;;  %v131_v16 = vld [vmem:[#allocation5 + $0x160] sm:$0xff]  ;;  %v132_v17 = vld [vmem:[#allocation5 + $0x168] sm:$0xff]  ;;  %v118_v20 = vld [vmem:[#allocation5 + $0xf8] sm:$0xff]  ;;  %v1500_v24 = vpack.c.bf16 %v100_v15, %v99_v11 }
  0x5e   :  { %1493 = vmatpush3.bf16.msra.mxu0 %v1492_v62  ;;  %v83_v21 = vld [vmem:[#allocation2 + $0x18] sm:$0xff]  ;;  %v149_v22 = vld [vmem:[#allocation5 + $0x1f0] sm:$0xff]  ;;  %v150_v23 = vld [vmem:[#allocation5 + $0x1f8] sm:$0xff]  ;;  %v1532_v25 = vpack.c.bf16 %v132_v17, %v131_v16  ;;  %v1502_v26 = vpack.c.bf16 %v118_v20, %v117_v19 }
  0x5f   :  { %1495 = vmatprep.subr.bf16.mxu0 %v1494_v0  ;;  %340 = vmatprep.mubr.f32.mxu1 %v83_v21  ;;  %v101_v27 = vld [vmem:[#allocation5 + $0x70] sm:$0xff]  ;;  %v102_v28 = vld [vmem:[#allocation5 + $0x78] sm:$0xff]  ;;  %v1534_v30 = vpack.c.bf16 %v150_v23, %v149_v22  ;;  %v167_v32 = vld [vmem:[#allocation5 + $0x280] sm:$0xff] }
  0x60   :  { %1525 = vmatpush3.bf16.msra.mxu1 %v1524_v63  ;;  %v133_v29 = vld [vmem:[#allocation5 + $0x170] sm:$0xff]  ;;  %v134_v31 = vld [vmem:[#allocation5 + $0x178] sm:$0xff]  ;;  %v168_v33 = vld [vmem:[#allocation5 + $0x288] sm:$0xff]  ;;  %v1504_v34 = vpack.c.bf16 %v102_v28, %v101_v27 }
  0x61   :  { %1527 = vmatprep.subr.bf16.mxu1 %v1526_v4  ;;  %v1536_v35 = vpack.c.bf16 %v134_v31, %v133_v29  ;;  %v1538_v36 = vpack.c.bf16 %v168_v33, %v167_v32  ;;  %v151_v37 = vld [vmem:[#allocation5 + $0x200] sm:$0xff]  ;;  %v152_v38 = vld [vmem:[#allocation5 + $0x208] sm:$0xff]  ;;  %v169_v39 = vld [vmem:[#allocation5 + $0x290] sm:$0xff] }
  0x62   :  { %1497 = vmatpush3.bf16.msra.mxu0 %v1496_v10  ;;  %v170_v40 = vld [vmem:[#allocation5 + $0x298] sm:$0xff]  ;;  %v183_v41 = vld [vmem:[#allocation5 + $0x300] sm:$0xff]  ;;  %v184_v42 = vld [vmem:[#allocation5 + $0x308] sm:$0xff]  ;;  %v1540_v44 = vpack.c.bf16 %v152_v38, %v151_v37 }
  0x63   :  { %1499 = vmatprep.subr.bf16.mxu0 %v1498_v14  ;;  %v80_v43 = vld [vmem:[#allocation2] sm:$0xff]  ;;  %v82_v45 = vld [vmem:[#allocation2 + $0x10] sm:$0xff]  ;;  %v1542_v46 = vpack.c.bf16 %v170_v40, %v169_v39  ;;  %v153_v47 = vld [vmem:[#allocation5 + $0x210] sm:$0xff]  ;;  %v1571_v49 = vpack.c.bf16 %v184_v42, %v183_v41 }
  0x64   :  { %1529 = vmatpush3.bf16.msra.mxu1 %v1528_v13  ;;  %v154_v48 = vld [vmem:[#allocation5 + $0x218] sm:$0xff]  ;;  %v171_v50 = vld [vmem:[#allocation5 + $0x2a0] sm:$0xff]  ;;  %v172_v52 = vld [vmem:[#allocation5 + $0x2a8] sm:$0xff] }
  0x65   :  { %1531 = vmatprep.subr.bf16.mxu1 %v1530_v18  ;;  %v185_v53 = vld [vmem:[#allocation5 + $0x310] sm:$0xff]  ;;  %v186_v54 = vld [vmem:[#allocation5 + $0x318] sm:$0xff]  ;;  %v1544_v55 = vpack.c.bf16 %v154_v48, %v153_v47  ;;  %v155_v56 = vld [vmem:[#allocation5 + $0x220] sm:$0xff]  ;;  %v1546_v57 = vpack.c.bf16 %v172_v52, %v171_v50 }
  0x66   :  { %1501 = vmatpush3.bf16.msra.mxu0 %v1500_v24  ;;  %v156_v58 = vld [vmem:[#allocation5 + $0x228] sm:$0xff]  ;;  %v1574_v59 = vpack.c.bf16 %v186_v54, %v185_v53  ;;  %v173_v60 = vld [vmem:[#allocation5 + $0x2b0] sm:$0xff]  ;;  %v174_v61 = vld [vmem:[#allocation5 + $0x2b8] sm:$0xff] }
  0x67   :  { %1503 = vmatprep.subr.bf16.mxu0 %v1502_v26  ;;  %v187_v62 = vld [vmem:[#allocation5 + $0x320] sm:$0xff]  ;;  %v188_v63 = vld [vmem:[#allocation5 + $0x328] sm:$0xff]  ;;  %v85_v0 = vld [vmem:[#allocation2 + $0x28] sm:$0xff]  ;;  %v1548_v2 = vpack.c.bf16 %v156_v58, %v155_v56  ;;  %v1550_v3 = vpack.c.bf16 %v174_v61, %v173_v60 }
  0x68   :  { %1533 = vmatpush3.bf16.msra.mxu1 %v1532_v25  ;;  %v157_v4 = vld [vmem:[#allocation5 + $0x230] sm:$0xff]  ;;  %v158_v5 = vld [vmem:[#allocation5 + $0x238] sm:$0xff]  ;;  %v1577_v6 = vpack.c.bf16 %v188_v63, %v187_v62  ;;  %v175_v7 = vld [vmem:[#allocation5 + $0x2c0] sm:$0xff] }
  0x69   :  { %1535 = vmatprep.subr.bf16.mxu1 %v1534_v30  ;;  %v176_v8 = vld [vmem:[#allocation5 + $0x2c8] sm:$0xff]  ;;  %v189_v9 = vld [vmem:[#allocation5 + $0x330] sm:$0xff]  ;;  %v190_v10 = vld [vmem:[#allocation5 + $0x338] sm:$0xff]  ;;  %v1552_v11 = vpack.c.bf16 %v158_v5, %v157_v4 }
  0x6a   :  { %1505 = vmatpush3.bf16.msra.mxu0 %v1504_v34  ;;  %v1554_v12 = vpack.c.bf16 %v176_v8, %v175_v7  ;;  %v159_v13 = vld [vmem:[#allocation5 + $0x240] sm:$0xff]  ;;  %v160_v14 = vld [vmem:[#allocation5 + $0x248] sm:$0xff]  ;;  %v1580_v15 = vpack.c.bf16 %v190_v10, %v189_v9  ;;  %v177_v16 = vld [vmem:[#allocation5 + $0x2d0] sm:$0xff] }
  0x6b   :  { %1539 = vmatprep.subr.bf16.mxu0 %v1538_v36  ;;  %v178_v17 = vld [vmem:[#allocation5 + $0x2d8] sm:$0xff]  ;;  %v191_v18 = vld [vmem:[#allocation5 + $0x340] sm:$0xff]  ;;  %v192_v19 = vld [vmem:[#allocation5 + $0x348] sm:$0xff]  ;;  %v1556_v20 = vpack.c.bf16 %v160_v14, %v159_v13 }
  0x6c   :  { %1537 = vmatpush3.bf16.msra.mxu1 %v1536_v35  ;;  %v1558_v21 = vpack.c.bf16 %v178_v17, %v177_v16  ;;  %v161_v22 = vld [vmem:[#allocation5 + $0x250] sm:$0xff]  ;;  %v162_v23 = vld [vmem:[#allocation5 + $0x258] sm:$0xff]  ;;  %v1583_v24 = vpack.c.bf16 %v192_v19, %v191_v18  ;;  %v179_v25 = vld [vmem:[#allocation5 + $0x2e0] sm:$0xff] }
  0x6d   :  { %1570 = vmatprep.subr.bf16.mxu1 %v1928_v51  ;;  %271 = vmatmul.mubr.f32.vlgmr.msra.gmra.mrb[0].mxu0 %v80_v43  ;;  %v180_v26 = vld [vmem:[#allocation5 + $0x2e8] sm:$0xff]  ;;  %v193_v27 = vld [vmem:[#allocation5 + $0x350] sm:$0xff]  ;;  %v194_v28 = vld [vmem:[#allocation5 + $0x358] sm:$0xff]  ;;  %v1560_v29 = vpack.c.bf16 %v162_v23, %v161_v22 }
  0x6e   :  { %1541 = vmatpush3.bf16.msra.mxu0 %v1540_v44  ;;  %410 = vmatprep.mubr.f32.mxu0 %v85_v0  ;;  %v1562_v30 = vpack.c.bf16 %v180_v26, %v179_v25  ;;  %v163_v31 = vld [vmem:[#allocation5 + $0x260] sm:$0xff]  ;;  %v164_v32 = vld [vmem:[#allocation5 + $0x268] sm:$0xff]  ;;  %v1586_v33 = vpack.c.bf16 %v194_v28, %v193_v27  ;;  %v181_v34 = vld [vmem:[#allocation5 + $0x2f0] sm:$0xff] }
  0x6f   :  { %341 = vmatmul.mubr.f32.vlgmr.msra.gmra.mrb[0].mxu1 %v82_v45  ;;  %1543 = vmatprep.subr.bf16.mxu0 %v1542_v46  ;;  %v182_v35 = vld [vmem:[#allocation5 + $0x2f8] sm:$0xff]  ;;  %v195_v36 = vld [vmem:[#allocation5 + $0x360] sm:$0xff]  ;;  %v196_v37 = vld [vmem:[#allocation5 + $0x368] sm:$0xff]  ;;  %v1564_v38 = vpack.c.bf16 %v164_v32, %v163_v31 }
  0x70   :  { %1572 = vmatpush3.bf16.msra.mxu1 %v1571_v49  ;;  %1401 = vmatprep.mubr.msk.f32.mxu1 %vm1929_vm0, %v1930_v1  ;;  %v1566_v39 = vpack.c.bf16 %v182_v35, %v181_v34  ;;  %v165_v40 = vld [vmem:[#allocation5 + $0x270] sm:$0xff]  ;;  %v166_v41 = vld [vmem:[#allocation5 + $0x278] sm:$0xff]  ;;  %v1589_v42 = vpack.c.bf16 %v196_v37, %v195_v36  ;;  %v84_v47 = vld [vmem:[#allocation2 + $0x20] sm:$0xff] }
  0x71   :  { %1573 = vmatprep.subr.bf16.mxu1 %v1928_v51  ;;  %v197_v43 = vld [vmem:[#allocation5 + $0x370] sm:$0xff]  ;;  %v198_v44 = vld [vmem:[#allocation5 + $0x378] sm:$0xff]  ;;  %v1568_v45 = vpack.c.bf16 %v166_v41, %v165_v40  ;;  %v487_v49 = vld [vmem:[#allocation7] sm:$0xff] }
  0x72   :  { %1545 = vmatpush3.bf16.msra.mxu0 %v1544_v55  ;;  %v1592_v46 = vpack.c.bf16 %v198_v44, %v197_v43  ;;  %v86_v48 = vld [vmem:[#allocation2 + $0x30] sm:$0xff]  ;;  %v488_v50 = vld [vmem:[#allocation7 + $0x8] sm:$0xff]  ;;  %v489_v52 = vld [vmem:[#allocation7 + $0x10] sm:$0xff] }
  0x73   :  { %1547 = vmatprep.subr.bf16.mxu0 %v1546_v57  ;;  %v1595_v53 = vpack.c.bf16 %v488_v50, %v487_v49  ;;  %v490_v54 = vld [vmem:[#allocation7 + $0x18] sm:$0xff]  ;;  %v491_v56 = vld [vmem:[#allocation7 + $0x20] sm:$0xff]  ;;  %v492_v57 = vld [vmem:[#allocation7 + $0x28] sm:$0xff] }
  0x74   :  { %1575 = vmatpush3.bf16.msra.mxu1 %v1574_v59  ;;  %v1598_v55 = vpack.c.bf16 %v490_v54, %v489_v52  ;;  %v1601_v58 = vpack.c.bf16 %v492_v57, %v491_v56  ;;  %v493_v59 = vld [vmem:[#allocation7 + $0x30] sm:$0xff]  ;;  %v494_v60 = vld [vmem:[#allocation7 + $0x38] sm:$0xff]  ;;  %v495_v62 = vld [vmem:[#allocation7 + $0x40] sm:$0xff] }
  0x75   :  { %1576 = vmatprep.subr.bf16.mxu1 %v1928_v51  ;;  %v1604_v61 = vpack.c.bf16 %v494_v60, %v493_v59  ;;  %v496_v63 = vld [vmem:[#allocation7 + $0x48] sm:$0xff]  ;;  %v499_v5 = vld [vmem:[#allocation7 + $0x60] sm:$0xff]  ;;  %v501_v8 = vld [vmem:[#allocation7 + $0x70] sm:$0xff] }
  0x76   :  { %1549 = vmatpush3.bf16.msra.mxu0 %v1548_v2  ;;  %v1607_v0 = vpack.c.bf16 %v496_v63, %v495_v62  ;;  %v497_v2 = vld [vmem:[#allocation7 + $0x50] sm:$0xff]  ;;  %v502_v9 = vld [vmem:[#allocation7 + $0x78] sm:$0xff]  ;;  %v581_v16 = vld [vmem:[#allocation8] sm:$0xff] }
  0x77   :  { %1551 = vmatprep.subr.bf16.mxu0 %v1550_v3  ;;  %v498_v3 = vld [vmem:[#allocation7 + $0x58] sm:$0xff]  ;;  %v1616_v10 = vpack.c.bf16 %v502_v9, %v501_v8  ;;  %v590_v17 = vld [vmem:[#allocation8 + $0x48] sm:$0xff]  ;;  %v599_v23 = vld [vmem:[#allocation8 + $0x90] sm:$0xff] }
  0x78   :  { %1578 = vmatpush3.bf16.msra.mxu1 %v1577_v6  ;;  %v1610_v4 = vpack.c.bf16 %v498_v3, %v497_v2  ;;  %v500_v6 = vld [vmem:[#allocation7 + $0x68] sm:$0xff]  ;;  %v584_v13 = vld [vmem:[#allocation8 + $0x18] sm:$0xff]  ;;  %v1620_v19 = vpack.c.bf16 %v590_v17, %v581_v16  ;;  %v627_v27 = vld [vmem:[#allocation8 + $0x170] sm:$0xff] }
  0x79   :  { %1579 = vmatprep.subr.bf16.mxu1 %v1928_v51  ;;  %v1613_v7 = vpack.c.bf16 %v500_v6, %v499_v5  ;;  %v618_v26 = vld [vmem:[#allocation8 + $0x128] sm:$0xff]  ;;  %v636_v32 = vld [vmem:[#allocation8 + $0x1b8] sm:$0xff]  ;;  %v635_v35 = vld [vmem:[#allocation8 + $0x1b0] sm:$0xff] }
  0x7a   :  { %1553 = vmatpush3.bf16.msra.mxu0 %v1552_v11  ;;  %v582_v11 = vld [vmem:[#allocation8 + $0x8] sm:$0xff]  ;;  %v1626_v28 = vpack.c.bf16 %v627_v27, %v618_v26  ;;  %v644_v36 = vld [vmem:[#allocation8 + $0x1f8] sm:$0xff]  ;;  %v653_v41 = vld [vmem:[#allocation8 + $0x240] sm:$0xff] }
  0x7b   :  { %1555 = vmatprep.subr.bf16.mxu0 %v1554_v12  ;;  %v591_v12 = vld [vmem:[#allocation8 + $0x50] sm:$0xff]  ;;  %v1632_v37 = vpack.c.bf16 %v644_v36, %v635_v35  ;;  %v672_v44 = vld [vmem:[#allocation8 + $0x2d8] sm:$0xff]  ;;  %v690_v50 = vld [vmem:[#allocation8 + $0x368] sm:$0xff] }
  0x7c   :  { %1581 = vmatpush3.bf16.msra.mxu1 %v1580_v15  ;;  %v1618_v14 = vpack.c.bf16 %v591_v12, %v582_v11  ;;  %v593_v15 = vld [vmem:[#allocation8 + $0x60] sm:$0xff]  ;;  %v699_v52 = vld [vmem:[#allocation8 + $0x3b0] sm:$0xff]  ;;  %v602_v11 = vld [vmem:[#allocation8 + $0xa8] sm:$0xff] }
  0x7d   :  { %1582 = vmatprep.subr.bf16.mxu1 %v1928_v51  ;;  %v1650_v18 = vpack.c.bf16 %v593_v15, %v584_v13  ;;  %v689_v54 = vld [vmem:[#allocation8 + $0x360] sm:$0xff]  ;;  %v583_v9 = vld [vmem:[#allocation8 + $0x10] sm:$0xff]  ;;  %v664_v36 = vld [vmem:[#allocation8 + $0x298] sm:$0xff] }
  0x7e   :  { %1557 = vmatpush3.bf16.msra.mxu0 %v1556_v20  ;;  %v600_v20 = vld [vmem:[#allocation8 + $0x98] sm:$0xff]  ;;  %v611_v12 = vld [vmem:[#allocation8 + $0xf0] sm:$0xff]  ;;  %v601_v17 = vld [vmem:[#allocation8 + $0xa0] sm:$0xff] }
  0x7f   :  { %1559 = vmatprep.subr.bf16.mxu0 %v1558_v21  ;;  %v609_v21 = vld [vmem:[#allocation8 + $0xe0] sm:$0xff]  ;;  %v1654_v16 = vpack.c.bf16 %v611_v12, %v602_v11  ;;  %v647_v26 = vld [vmem:[#allocation8 + $0x210] sm:$0xff]  ;;  %v604_v11 = vld [vmem:[#allocation8 + $0xb8] sm:$0xff] }
  0x80   :  { %1584 = vmatpush3.bf16.msra.mxu1 %v1583_v24  ;;  %v1622_v22 = vpack.c.bf16 %v609_v21, %v600_v20  ;;  %v608_v24 = vld [vmem:[#allocation8 + $0xd8] sm:$0xff]  ;;  %v629_v20 = vld [vmem:[#allocation8 + $0x180] sm:$0xff]  ;;  %v655_v35 = vld [vmem:[#allocation8 + $0x250] sm:$0xff] }
  0x81   :  { %1585 = vmatprep.subr.bf16.mxu1 %v1928_v51  ;;  %v1624_v25 = vpack.c.bf16 %v608_v24, %v599_v23  ;;  %v619_v23 = vld [vmem:[#allocation8 + $0x130] sm:$0xff]  ;;  %v628_v24 = vld [vmem:[#allocation8 + $0x178] sm:$0xff] }
  0x82   :  { %1561 = vmatpush3.bf16.msra.mxu0 %v1560_v29  ;;  %v617_v29 = vld [vmem:[#allocation8 + $0x120] sm:$0xff]  ;;  %v1660_v27 = vpack.c.bf16 %v628_v24, %v619_v23 }
  0x83   :  { %1563 = vmatprep.subr.bf16.mxu0 %v1562_v30  ;;  %v626_v30 = vld [vmem:[#allocation8 + $0x168] sm:$0xff] }
  0x84   :  { %1587 = vmatpush3.bf16.msra.mxu1 %v1586_v33  ;;  %v1628_v31 = vpack.c.bf16 %v626_v30, %v617_v29  ;;  %v645_v33 = vld [vmem:[#allocation8 + $0x200] sm:$0xff]  ;;  %v646_v30 = vld [vmem:[#allocation8 + $0x208] sm:$0xff] }
  0x85   :  { %1588 = vmatprep.subr.bf16.mxu1 %v1928_v51  ;;  %v1630_v34 = vpack.c.bf16 %v645_v33, %v636_v32  ;;  %v637_v29 = vld [vmem:[#allocation8 + $0x1c0] sm:$0xff] }
  0x86   :  { %1565 = vmatpush3.bf16.msra.mxu0 %v1564_v38  ;;  %v654_v38 = vld [vmem:[#allocation8 + $0x248] sm:$0xff]  ;;  %v665_v32 = vld [vmem:[#allocation8 + $0x2a0] sm:$0xff]  ;;  %v1664_v33 = vpack.c.bf16 %v646_v30, %v637_v29  ;;  %v624_v29 = vld [vmem:[#allocation8 + $0x158] sm:$0xff] }
  0x87   :  { %1567 = vmatprep.subr.bf16.mxu0 %v1566_v39  ;;  %v663_v39 = vld [vmem:[#allocation8 + $0x290] sm:$0xff]  ;;  %v633_v30 = vld [vmem:[#allocation8 + $0x1a0] sm:$0xff] }
  0x88   :  { %1590 = vmatpush3.bf16.msra.mxu1 %v1589_v42  ;;  %v1634_v40 = vpack.c.bf16 %v663_v39, %v654_v38  ;;  %v662_v42 = vld [vmem:[#allocation8 + $0x288] sm:$0xff]  ;;  %v683_v38 = vld [vmem:[#allocation8 + $0x330] sm:$0xff]  ;;  %v1668_v39 = vpack.c.bf16 %v664_v36, %v655_v35  ;;  %v1722_v36 = vpack.c.bf16 %v633_v30, %v624_v29 }
  0x89   :  { %1591 = vmatprep.subr.bf16.mxu1 %v1928_v51  ;;  %v1636_v43 = vpack.c.bf16 %v662_v42, %v653_v41  ;;  %v673_v41 = vld [vmem:[#allocation8 + $0x2e0] sm:$0xff]  ;;  %v682_v42 = vld [vmem:[#allocation8 + $0x328] sm:$0xff]  ;;  %v723_v29 = vld [vmem:[#allocation8 + $0x470] sm:$0xff] }
  0x8a   :  { %1569 = vmatpush3.bf16.msra.mxu0 %v1568_v45  ;;  %v681_v45 = vld [vmem:[#allocation8 + $0x320] sm:$0xff] }
  0x8b   :  { %1594 = vmatprep.subr.bf16.mxu0 %v1928_v51 }
  0x8c   :  { %1593 = vmatpush3.bf16.msra.mxu1 %v1592_v46  ;;  %v1638_v46 = vpack.c.bf16 %v681_v45, %v672_v44  ;;  %v701_v44 = vld [vmem:[#allocation8 + $0x3c0] sm:$0xff]  ;;  %v1672_v45 = vpack.c.bf16 %v682_v42, %v673_v41  ;;  %v642_v41 = vld [vmem:[#allocation8 + $0x1e8] sm:$0xff]  ;;  %v651_v42 = vld [vmem:[#allocation8 + $0x230] sm:$0xff] }
  0x8d   :  { %411 = vmatmul.mubr.f32.vlgmr.msra.gmra.mrb[2].mxu0 %v84_v47  ;;  %1619 = vmatprep.subr.bf16.mxu1 %v1618_v14  ;;  %v671_v47 = vld [vmem:[#allocation8 + $0x2d0] sm:$0xff] }
  0x8e   :  { %1436 = vmatprep.mubr.msk.f32.mxu0 %vm1929_vm0, %v1930_v1  ;;  %1596 = vmatpush3.bf16.msra.mxu0 %v1595_v53  ;;  %v1642_v53 = vpack.c.bf16 %v699_v52, %v690_v50  ;;  %v708_v50 = vld [vmem:[#allocation8 + $0x3f8] sm:$0xff]  ;;  %v717_v52 = vld [vmem:[#allocation8 + $0x440] sm:$0xff] }
  0x8f   :  { %1402 = vmatmul.mubr.f32.vlgmr.msra.gmra.mrb[2].mxu1 %v86_v48  ;;  %1597 = vmatprep.subr.bf16.mxu0 %v1928_v51  ;;  %v680_v48 = vld [vmem:[#allocation8 + $0x318] sm:$0xff] }
  0x90   :  { %838 = vmatprep.mubr.f32.mxu1 %v1930_v1  ;;  %1621 = vmatpush1.bf16.msra.mxu1 %v1620_v19  ;;  %v1640_v49 = vpack.c.bf16 %v680_v48, %v671_v47  ;;  %v620_v19 = vld [vmem:[#allocation8 + $0x138] sm:$0xff]  ;;  %v691_v47 = vld [vmem:[#allocation8 + $0x370] sm:$0xff] }
  0x91   :  { %1623 = vmatprep.subr.bf16.mxu1 %v1622_v22  ;;  %v1658_v22 = vpack.c.bf16 %v629_v20, %v620_v19  ;;  %v700_v48 = vld [vmem:[#allocation8 + $0x3b8] sm:$0xff]  ;;  %v603_v20 = vld [vmem:[#allocation8 + $0xb0] sm:$0xff] }
  0x92   :  { %1599 = vmatpush3.bf16.msra.mxu0 %v1598_v55  ;;  %v698_v55 = vld [vmem:[#allocation8 + $0x3a8] sm:$0xff] }
  0x93   :  { %1600 = vmatprep.subr.bf16.mxu0 %v1928_v51  ;;  %v1644_v56 = vpack.c.bf16 %v698_v55, %v689_v54  ;;  %v1646_v54 = vpack.c.bf16 %v717_v52, %v708_v50  ;;  %v719_v55 = vld [vmem:[#allocation8 + $0x450] sm:$0xff]  ;;  %v650_v50 = vld [vmem:[#allocation8 + $0x228] sm:$0xff] }
  0x94   :  { %1625 = vmatpush1.bf16.msra.mxu1 %v1624_v25  ;;  %v638_v25 = vld [vmem:[#allocation8 + $0x1c8] sm:$0xff] }
  0x95   :  { %1627 = vmatprep.subr.bf16.mxu1 %v1626_v28  ;;  %v1662_v28 = vpack.c.bf16 %v647_v26, %v638_v25  ;;  %v605_v25 = vld [vmem:[#allocation8 + $0xc0] sm:$0xff]  ;;  %v614_v26 = vld [vmem:[#allocation8 + $0x108] sm:$0xff] }
  0x96   :  { %1602 = vmatpush3.bf16.msra.mxu0 %v1601_v58  ;;  %v1210_v58 = vld [vmem:[%s2093_s2] ss:$0 sm:$0xff] }
  0x97   :  { %1603 = vmatprep.subr.bf16.mxu0 %v1928_v51  ;;  %v658_v52 = vld [vmem:[#allocation8 + $0x268] sm:$0xff] }
  0x98   :  { %1629 = vmatpush1.bf16.msra.mxu1 %v1628_v31  ;;  %v656_v31 = vld [vmem:[#allocation8 + $0x258] sm:$0xff] }
  0x99   :  { %1631 = vmatprep.subr.bf16.mxu1 %v1630_v34  ;;  %v1666_v34 = vpack.c.bf16 %v665_v32, %v656_v31  ;;  %v1720_v32 = vpack.c.bf16 %v614_v26, %v605_v25  ;;  %v704_v25 = vld [vmem:[#allocation8 + $0x3d8] sm:$0xff] }
  0x9a   :  { %1605 = vmatpush3.bf16.msra.mxu0 %v1604_v61  ;;  %v712_v26 = vld [vmem:[#allocation8 + $0x418] sm:$0xff] }
  0x9b   :  { %1606 = vmatprep.subr.bf16.mxu0 %v1928_v51 }
  0x9c   :  { %1633 = vmatpush1.bf16.msra.mxu1 %v1632_v37  ;;  %v674_v37 = vld [vmem:[#allocation8 + $0x2e8] sm:$0xff] }
  0x9d   :  { %1635 = vmatprep.subr.bf16.mxu1 %v1634_v40  ;;  %v1670_v40 = vpack.c.bf16 %v683_v38, %v674_v37  ;;  %v623_v37 = vld [vmem:[#allocation8 + $0x150] sm:$0xff]  ;;  %v632_v38 = vld [vmem:[#allocation8 + $0x198] sm:$0xff] }
  0x9e   :  { %1608 = vmatpush3.bf16.msra.mxu0 %v1607_v0 }
  0x9f   :  { %1609 = vmatprep.subr.bf16.mxu0 %v1928_v51 }
  0xa0   :  { %1637 = vmatpush1.bf16.msra.mxu1 %v1636_v43  ;;  %v692_v43 = vld [vmem:[#allocation8 + $0x378] sm:$0xff] }
  0xa1   :  { %1639 = vmatprep.subr.bf16.mxu1 %v1638_v46  ;;  %v1674_v46 = vpack.c.bf16 %v701_v44, %v692_v43  ;;  %v1724_v44 = vpack.c.bf16 %v632_v38, %v623_v37  ;;  %v722_v37 = vld [vmem:[#allocation8 + $0x468] sm:$0xff] }
  0xa2   :  { %1611 = vmatpush3.bf16.msra.mxu0 %v1610_v4 }
  0xa3   :  { %1612 = vmatprep.subr.bf16.mxu0 %v1928_v51 }
  0xa4   :  { %1641 = vmatpush1.bf16.msra.mxu1 %v1640_v49  ;;  %v1676_v49 = vpack.c.bf16 %v700_v48, %v691_v47  ;;  %v1726_v48 = vpack.c.bf16 %v651_v42, %v642_v41  ;;  %v598_v41 = vld [vmem:[#allocation8 + $0x88] sm:$0xff] }
  0xa5   :  { %1643 = vmatprep.subr.bf16.mxu1 %v1642_v53  ;;  %v710_v53 = vld [vmem:[#allocation8 + $0x408] sm:$0xff] }
  0xa6   :  { %1614 = vmatpush3.bf16.msra.mxu0 %v1613_v7 }
  0xa7   :  { %1615 = vmatprep.subr.bf16.mxu0 %v1928_v51 }
  0xa8   :  { %1645 = vmatpush1.bf16.msra.mxu1 %v1644_v56  ;;  %v707_v56 = vld [vmem:[#allocation8 + $0x3f0] sm:$0xff] }
  0xa9   :  { %1647 = vmatprep.subr.bf16.mxu1 %v1646_v54  ;;  %v660_v54 = vld [vmem:[#allocation8 + $0x278] sm:$0xff] }
  0xaa   :  { %1617 = vmatpush3.bf16.msra.mxu0 %v1616_v10  ;;  %v592_v10 = vld [vmem:[#allocation8 + $0x58] sm:$0xff] }
  0xab   :  { %1651 = vmatprep.subr.bf16.mxu0 %v1650_v18  ;;  %v1652_v14 = vpack.c.bf16 %v592_v10, %v583_v9  ;;  %v610_v18 = vld [vmem:[#allocation8 + $0xe8] sm:$0xff]  ;;  %v587_v9 = vld [vmem:[#allocation8 + $0x30] sm:$0xff]  ;;  %v596_v10 = vld [vmem:[#allocation8 + $0x78] sm:$0xff] }
  0xac   :  { %v1656_v21 = vpack.c.bf16 %v610_v18, %v601_v17  ;;  %v1716_v19 = vpack.c.bf16 %v596_v10, %v587_v9 }
 0x140   :  { %v1245_v57 = vpop.f32.mrb[0].mxu0 }
 0x141   :  { %v1246_v59 = vpop.f32.mrb[1].mxu0 }
 0x142   :  { %v1280_v60 = vpop.f32.mrb[0].mxu1  ;;  %v1247_v61 = vadd.f32 %v1246_v59, %v1245_v57  ;;  %v716_v57 = vld [vmem:[#allocation8 + $0x438] sm:$0xff] }
 0x143   :  { %v1281_v62 = vpop.f32.mrb[1].mxu1  ;;  %v1648_v59 = vpack.c.bf16 %v716_v57, %v707_v56 }
 0x144   :  { %v1282_v63 = vadd.f32 %v1281_v62, %v1280_v60  ;;  %v273_v0 = vadd.f32 %v1247_v61, %v1210_v58  ;;  %v1678_v58 = vpack.c.bf16 %v719_v55, %v710_v53  ;;  %v709_v60 = vld [vmem:[#allocation8 + $0x400] sm:$0xff]  ;;  %v718_v61 = vld [vmem:[#allocation8 + $0x448] sm:$0xff]  ;;  %v667_v53 = vld [vmem:[#allocation8 + $0x2b0] sm:$0xff] }
 0x145   :  { %v1680_v62 = vpack.c.bf16 %v718_v61, %v709_v60  ;;  %1649 = vmatpush1.bf16.msra.mxu1 %v1648_v59  ;;  %v669_v55 = vld [vmem:[#allocation8 + $0x2c0] sm:$0xff]  ;;  %v666_v59 = vld [vmem:[#allocation8 + $0x2a8] sm:$0xff]  ;;  %v1698_v60 = vpack.c.bf16 %v667_v53, %v658_v52 }
 0x146   :  { %v343_v2 = vadd.f32 %v1282_v63, %v273_v0  ;;  %v586_v63 = vld [vmem:[#allocation8 + $0x28] sm:$0xff]  ;;  %v595_v0 = vld [vmem:[#allocation8 + $0x70] sm:$0xff]  ;;  %v1730_v61 = vpack.c.bf16 %v669_v55, %v660_v54  ;;  %v661_v53 = vld [vmem:[#allocation8 + $0x280] sm:$0xff] }
 0x147   :  { %v670_v54 = vld [vmem:[#allocation8 + $0x2c8] sm:$0xff] }
 0x148   :  { %v1759_v55 = vpack.c.bf16 %v670_v54, %v661_v53 }
 0x160   :  { %v1315_v3 = vpop.f32.mrb[2].mxu0 }
 0x161   :  { %v1316_v4 = vpop.f32.mrb[3].mxu0 }
 0x162   :  { %v482_v5 = vpop.f32.mrb[2].mxu1  ;;  %v1317_v6 = vadd.f32 %v1316_v4, %v1315_v3  ;;  %v1682_v3 = vpack.c.bf16 %v595_v0, %v586_v63  ;;  %v597_v4 = vld [vmem:[#allocation8 + $0x80] sm:$0xff]  ;;  %v668_v63 = vld [vmem:[#allocation8 + $0x2b8] sm:$0xff] }
 0x163   :  { %v1403_v7 = vpop.f32.mrb[3].mxu1  ;;  %v676_v0 = vld [vmem:[#allocation8 + $0x2f8] sm:$0xff] }
 0x164   :  { %v413_v8 = vadd.f32 %v1317_v6, %v343_v2  ;;  %v588_v2 = vld [vmem:[#allocation8 + $0x38] sm:$0xff]  ;;  %1683 = vmatprep.subr.bf16.mxu1 %v1682_v3  ;;  %v1211_v6 = vld [vmem:[%s2095_s4] ss:$0 sm:$0xff]  ;;  %v585_v7 = vld [vmem:[#allocation8 + $0x20] sm:$0xff] }
 0x165   :  { %v678_v3 = vld [vmem:[#allocation8 + $0x308] sm:$0xff] }
 0x166   :  { %v483_v13 = vadd.f32 %v482_v5, %v413_v8  ;;  %v1714_v5 = vpack.c.bf16 %v597_v4, %v588_v2  ;;  %v594_v8 = vld [vmem:[#allocation8 + $0x68] sm:$0xff]  ;;  %v685_v2 = vld [vmem:[#allocation8 + $0x340] sm:$0xff]  ;;  %v687_v4 = vld [vmem:[#allocation8 + $0x350] sm:$0xff] }
 0x167   :  { %v1684_v18 = vpack.c.bf16 %v594_v8, %v585_v7  ;;  %v675_v7 = vld [vmem:[#allocation8 + $0x2f0] sm:$0xff]  ;;  %v684_v8 = vld [vmem:[#allocation8 + $0x338] sm:$0xff]  ;;  %v1702_v9 = vpack.c.bf16 %v685_v2, %v676_v0  ;;  %v1734_v10 = vpack.c.bf16 %v687_v4, %v678_v3  ;;  %v729_v0 = vlaneseq  ;;  %v725_v4 = vld [vmem:[%s2097_s6] sm:$0xff] }
 0x168   :  { %v486_v15 = vmax.f32 %v483_v13, 0.0  ;;  %v613_v13 = vld [vmem:[#allocation8 + $0x100] sm:$0xff] }
 0x169   :  { %v1686_v23 = vpack.c.bf16 %v613_v13, %v604_v11  ;;  %v677_v11 = vld [vmem:[#allocation8 + $0x300] sm:$0xff]  ;;  %v694_v13 = vld [vmem:[#allocation8 + $0x388] sm:$0xff]  ;;  %v730_v2 = vshrl.u32 %v729_v0, 7 }
 0x16a   :  { %1437 = vmatmul.mubr.f32.vlgmr.msra.gmra.mrb[4].mxu0 %v486_v15  ;;  %v615_v15 = vld [vmem:[#allocation8 + $0x110] sm:$0xff] }
 0x16b   :  { %1653 = vmatpush1.bf16.msra.mxu0 %v1652_v14  ;;  %909 = vmatprep.mubr.f32.mxu0 %v1930_v1  ;;  %v606_v14 = vld [vmem:[#allocation8 + $0xc8] sm:$0xff]  ;;  %v731_v3 = vsub.s32 0, %v730_v2 }
 0x16c   :  { %1655 = vmatprep.subr.bf16.mxu0 %v1654_v16  ;;  %v1718_v24 = vpack.c.bf16 %v615_v15, %v606_v14  ;;  %v703_v14 = vld [vmem:[#allocation8 + $0x3d0] sm:$0xff]  ;;  %v696_v15 = vld [vmem:[#allocation8 + $0x398] sm:$0xff] }
 0x16f   :  { %1657 = vmatpush1.bf16.msra.mxu0 %v1656_v21  ;;  %v612_v21 = vld [vmem:[#allocation8 + $0xf8] sm:$0xff] }
 0x170   :  { %1659 = vmatprep.subr.bf16.mxu0 %v1658_v22  ;;  %v1688_v31 = vpack.c.bf16 %v612_v21, %v603_v20  ;;  %v702_v20 = vld [vmem:[#allocation8 + $0x3c8] sm:$0xff]  ;;  %v1706_v21 = vpack.c.bf16 %v703_v14, %v694_v13 }
 0x173   :  { %1661 = vmatpush1.bf16.msra.mxu0 %v1660_v27  ;;  %v622_v27 = vld [vmem:[#allocation8 + $0x148] sm:$0xff] }
 0x174   :  { %1663 = vmatprep.subr.bf16.mxu0 %v1662_v28  ;;  %v631_v28 = vld [vmem:[#allocation8 + $0x190] sm:$0xff] }
 0x175   :  { %v1690_v35 = vpack.c.bf16 %v631_v28, %v622_v27  ;;  %v721_v27 = vld [vmem:[#allocation8 + $0x460] sm:$0xff]  ;;  %v714_v28 = vld [vmem:[#allocation8 + $0x428] sm:$0xff] }
 0x177   :  { %1665 = vmatpush1.bf16.msra.mxu0 %v1664_v33  ;;  %v621_v33 = vld [vmem:[#allocation8 + $0x140] sm:$0xff] }
 0x178   :  { %1667 = vmatprep.subr.bf16.mxu0 %v1666_v34  ;;  %v630_v34 = vld [vmem:[#allocation8 + $0x188] sm:$0xff] }
 0x179   :  { %v1692_v43 = vpack.c.bf16 %v630_v34, %v621_v33  ;;  %v1710_v33 = vpack.c.bf16 %v721_v27, %v712_v26  ;;  %v1742_v34 = vpack.c.bf16 %v723_v29, %v714_v28  ;;  %v759_v27 = vsub.s32 7, %v730_v2 }
 0x17b   :  { %1669 = vmatpush1.bf16.msra.mxu0 %v1668_v39  ;;  %v640_v39 = vld [vmem:[#allocation8 + $0x1d8] sm:$0xff] }
 0x17c   :  { %1671 = vmatprep.subr.bf16.mxu0 %v1670_v40  ;;  %v649_v40 = vld [vmem:[#allocation8 + $0x220] sm:$0xff] }
 0x17d   :  { %v1694_v47 = vpack.c.bf16 %v649_v40, %v640_v39  ;;  %v589_v40 = vld [vmem:[#allocation8 + $0x40] sm:$0xff] }
 0x17e   :  { %v1747_v42 = vpack.c.bf16 %v598_v41, %v589_v40 }
 0x17f   :  { %1673 = vmatpush1.bf16.msra.mxu0 %v1672_v45  ;;  %v639_v45 = vld [vmem:[#allocation8 + $0x1d0] sm:$0xff] }
 0x180   :  { %1675 = vmatprep.subr.bf16.mxu0 %v1674_v46  ;;  %v648_v46 = vld [vmem:[#allocation8 + $0x218] sm:$0xff] }
 0x181   :  { %v1696_v56 = vpack.c.bf16 %v648_v46, %v639_v45  ;;  %v625_v46 = vld [vmem:[#allocation8 + $0x160] sm:$0xff] }
 0x183   :  { %1677 = vmatpush1.bf16.msra.mxu0 %v1676_v49  ;;  %v641_v49 = vld [vmem:[#allocation8 + $0x1e0] sm:$0xff] }
 0x184   :  { %1679 = vmatprep.subr.bf16.mxu0 %v1678_v58  ;;  %v1728_v57 = vpack.c.bf16 %v650_v50, %v641_v49  ;;  %v657_v58 = vld [vmem:[#allocation8 + $0x260] sm:$0xff]  ;;  %v643_v49 = vld [vmem:[#allocation8 + $0x1f0] sm:$0xff]  ;;  %v652_v50 = vld [vmem:[#allocation8 + $0x238] sm:$0xff] }
 0x185   :  { %v1756_v52 = vpack.c.bf16 %v652_v50, %v643_v49 }
 0x187   :  { %1681 = vmatpush1.bf16.msra.mxu0 %v1680_v62  ;;  %v659_v62 = vld [vmem:[#allocation8 + $0x270] sm:$0xff] }
 0x188   :  { %1715 = vmatprep.subr.bf16.mxu0 %v1714_v5  ;;  %v1700_v5 = vpack.c.bf16 %v666_v59, %v657_v58  ;;  %v697_v58 = vld [vmem:[#allocation8 + $0x3a0] sm:$0xff]  ;;  %v706_v59 = vld [vmem:[#allocation8 + $0x3e8] sm:$0xff] }
 0x23d   :  { %v576_v12 = vpop.f32.mrb[4].mxu0 }
 0x23e   :  { %v577_v16 = vadd.f32 %v1211_v6, %v576_v12  ;;  %v1438_v17 = vpop.f32.mrb[5].mxu0  ;;  %v1732_v6 = vpack.c.bf16 %v668_v63, %v659_v62  ;;  %v686_v12 = vld [vmem:[#allocation8 + $0x348] sm:$0xff]  ;;  %v724_v62 = vld [vmem:[#allocation8 + $0x478] sm:$0xff] }
 0x23f   :  { %v1704_v17 = vpack.c.bf16 %v684_v8, %v675_v7  ;;  %v732_v7 = vrot.slane %v725_v4, %v731_v3 }
 0x240   :  { %v2054_v22 = vmax.f32 %v577_v16, 0.0  ;;  %v705_v16 = vld [vmem:[#allocation8 + $0x3e0] sm:$0xff] }
 0x242   :  { %839 = vmatmul.mubr.f32.vlgmr.msra.gmra.mrb[4].mxu1 %v2054_v22  ;;  %910 = vmatmul.mubr.f32.vlgmr.msra.gmra.mrb[6].mxu0 %v2054_v22 }
 0x243   :  { %1685 = vmatpush1.bf16.msra.mxu1 %v1684_v18  ;;  %1717 = vmatpush1.bf16.msra.mxu0 %v1716_v19  ;;  %v1736_v18 = vpack.c.bf16 %v686_v12, %v677_v11  ;;  %v693_v19 = vld [vmem:[#allocation8 + $0x380] sm:$0xff] }
 0x244   :  { %1687 = vmatprep.subr.bf16.mxu1 %v1686_v23  ;;  %1719 = vmatprep.subr.bf16.mxu0 %v1718_v24  ;;  %v1738_v23 = vpack.c.bf16 %v705_v16, %v696_v15  ;;  %v695_v24 = vld [vmem:[#allocation8 + $0x390] sm:$0xff]  ;;  %v1708_v30 = vpack.c.bf16 %v702_v20, %v693_v19 }
 0x245   :  { %980 = vmatprep.mubr.f32.mxu1 %v1930_v1  ;;  %1051 = vmatprep.mubr.f32.mxu0 %v1930_v1 }
 0x247   :  { %1689 = vmatpush1.bf16.msra.mxu1 %v1688_v31  ;;  %1721 = vmatpush1.bf16.msra.mxu0 %v1720_v32  ;;  %v1740_v31 = vpack.c.bf16 %v704_v25, %v695_v24  ;;  %v711_v32 = vld [vmem:[#allocation8 + $0x410] sm:$0xff]  ;;  %v755_v25 = vsub.s32 6, %v730_v2 }
 0x248   :  { %1691 = vmatprep.subr.bf16.mxu1 %v1690_v35  ;;  %1723 = vmatprep.subr.bf16.mxu0 %v1722_v36  ;;  %v720_v35 = vld [vmem:[#allocation8 + $0x458] sm:$0xff]  ;;  %v713_v36 = vld [vmem:[#allocation8 + $0x420] sm:$0xff] }
 0x249   :  { %v1712_v38 = vpack.c.bf16 %v720_v35, %v711_v32  ;;  %v1744_v39 = vpack.c.bf16 %v722_v37, %v713_v36  ;;  %v760_v36 = vrot.slane %v725_v4, %v759_v27 }
 0x24b   :  { %1693 = vmatpush1.bf16.msra.mxu1 %v1692_v43  ;;  %1725 = vmatpush1.bf16.msra.mxu0 %v1724_v44  ;;  %v607_v43 = vld [vmem:[#allocation8 + $0xd0] sm:$0xff]  ;;  %v616_v44 = vld [vmem:[#allocation8 + $0x118] sm:$0xff] }
 0x24c   :  { %1695 = vmatprep.subr.bf16.mxu1 %v1694_v47  ;;  %1727 = vmatprep.subr.bf16.mxu0 %v1726_v48  ;;  %v1750_v45 = vpack.c.bf16 %v616_v44, %v607_v43  ;;  %v634_v47 = vld [vmem:[#allocation8 + $0x1a8] sm:$0xff] }
 0x24d   :  { %v1753_v48 = vpack.c.bf16 %v634_v47, %v625_v46 }
 0x24f   :  { %1697 = vmatpush1.bf16.msra.mxu1 %v1696_v56  ;;  %1729 = vmatpush1.bf16.msra.mxu0 %v1728_v57  ;;  %v688_v56 = vld [vmem:[#allocation8 + $0x358] sm:$0xff] }
 0x250   :  { %1699 = vmatprep.subr.bf16.mxu1 %v1698_v60  ;;  %1731 = vmatprep.subr.bf16.mxu0 %v1730_v61  ;;  %v1765_v60 = vpack.c.bf16 %v706_v59, %v697_v58  ;;  %v715_v61 = vld [vmem:[#allocation8 + $0x430] sm:$0xff] }
 0x251   :  { %v1768_v63 = vpack.c.bf16 %v724_v62, %v715_v61 }
 0x253   :  { %1701 = vmatpush1.bf16.msra.mxu1 %v1700_v5  ;;  %1733 = vmatpush1.bf16.msra.mxu0 %v1732_v6  ;;  %v735_v5 = vsub.s32 1, %v730_v2  ;;  %v739_v6 = vsub.s32 2, %v730_v2 }
 0x254   :  { %1703 = vmatprep.subr.bf16.mxu1 %v1702_v9  ;;  %1735 = vmatprep.subr.bf16.mxu0 %v1734_v10  ;;  %v743_v9 = vsub.s32 3, %v730_v2 }
 0x255   :  { %v736_v8 = vrot.slane %v725_v4, %v735_v5  ;;  %v740_v11 = vrot.slane %v725_v4, %v739_v6 }
 0x257   :  { %1705 = vmatpush1.bf16.msra.mxu1 %v1704_v17  ;;  %1737 = vmatpush1.bf16.msra.mxu0 %v1736_v18 }
 0x258   :  { %1707 = vmatprep.subr.bf16.mxu1 %v1706_v21  ;;  %1739 = vmatprep.subr.bf16.mxu0 %v1738_v23  ;;  %v747_v21 = vsub.s32 4, %v730_v2  ;;  %v751_v23 = vsub.s32 5, %v730_v2 }
 0x25a   :  { %v748_v24 = vrot.slane %v725_v4, %v747_v21  ;;  %v752_v26 = vrot.slane %v725_v4, %v751_v23 }
 0x25b   :  { %1709 = vmatpush1.bf16.msra.mxu1 %v1708_v30  ;;  %1741 = vmatpush1.bf16.msra.mxu0 %v1740_v31  ;;  %v756_v31 = vrot.slane %v725_v4, %v755_v25 }
 0x25c   :  { %1711 = vmatprep.subr.bf16.mxu1 %v1710_v33  ;;  %1743 = vmatprep.subr.bf16.mxu0 %v1742_v34 }
 0x25f   :  { %1713 = vmatpush1.bf16.msra.mxu1 %v1712_v38  ;;  %1745 = vmatpush1.bf16.msra.mxu0 %v1744_v39 }
 0x260   :  { %1746 = vmatprep.subr.bf16.mxu1 %v1928_v51 }
 0x262   :  { %981 = vmatmul.mubr.f32.vlgmr.msra.gmra.mrb[6].mxu1 %v2054_v22  ;;  %1052 = vmatmul.mubr.f32.vlgmr.msra.gmra.mrb[8].mxu0 %v2054_v22 }
 0x263   :  { %1748 = vmatpush3.bf16.msra.mxu1 %v1747_v42  ;;  %1471 = vmatprep.mubr.msk.f32.mxu1 %vm1929_vm0, %v1930_v1  ;;  %v679_v1 = vld [vmem:[#allocation8 + $0x310] sm:$0xff] }
 0x264   :  { %1749 = vmatprep.subr.bf16.mxu1 %v1928_v51  ;;  %v1762_v57 = vpack.c.bf16 %v688_v56, %v679_v1  ;;  %v1212_v42 = vld [vmem:[%s2097_s6 + $0x8] ss:$0 sm:$0xff]  ;;  %s1931_s6 = smov [#allocation10]  }
 0x265   :  { %s1199_s8 = sshll.u32 %s1931_s6, 4  ;;  %s1200_s8 = int_to_ptr.vmem [resolvable:$true] %s1199_s8 }
 0x266   :  { %s1890_s9 = scalar_lea.vmem %s1200_s8, 1152  ;;  %p1895_p5 = scmp.lt.s32.totalorder %s1200_s8, %s1200_s8 }
 0x267   :  { %1751 = vmatpush3.bf16.msra.mxu1 %v1750_v45  ;;  %p1891_p4 = scmp.ne.s32.totalorder %s1200_s8, %s1890_s9  ;;  %p1896_p6 = scmp.lt.s32.totalorder %s1890_s9, %s1890_s9 }
 0x268   :  { %1752 = vmatprep.subr.bf16.mxu1 %v1928_v51 }
 0x269   :  { %p1897_p7 = por %p1896_p6, %p1895_p5 }
 0x26b   :  { %1754 = vmatpush3.bf16.msra.mxu1 %v1753_v48  ;;  %p1898_p8 = pnand %p1897_p7, %p1891_p4 }
 0x26c   :  { %1755 = vmatprep.subr.bf16.mxu1 %v1928_v51 }
 0x26f   :  { %1757 = vmatpush3.bf16.msra.mxu1 %v1756_v52 }
 0x270   :  { %1758 = vmatprep.subr.bf16.mxu1 %v1928_v51 }
 0x273   :  { %1760 = vmatpush3.bf16.msra.mxu1 %v1759_v55 }
 0x274   :  { %1761 = vmatprep.subr.bf16.mxu1 %v1928_v51 }
 0x277   :  { %1763 = vmatpush3.bf16.msra.mxu1 %v1762_v57 }
 0x278   :  { %1764 = vmatprep.subr.bf16.mxu1 %v1928_v51 }
 0x27b   :  { %1766 = vmatpush3.bf16.msra.mxu1 %v1765_v60 }
 0x27c   :  { %1767 = vmatprep.subr.bf16.mxu1 %v1928_v51 }
 0x27f   :  { %1769 = vmatpush3.bf16.msra.mxu1 %v1768_v63 }
 0x282   :  { %1472 = vmatmul.mubr.f32.vlgmr.msra.gmra.mrb[8].mxu1 %v2054_v22  ;;  %v744_v22 = vrot.slane %v725_v4, %v743_v9 }
 0x315   :  { %v840_v10 = vpop.f32.mrb[4].mxu1  ;;  %v911_v12 = vpop.f32.mrb[6].mxu0 }
 0x316   :  { %v841_v13 = vadd.f32 %v840_v10, %v732_v7  ;;  %v842_v51 = vpop.f32.mrb[5].mxu1  ;;  %v913_v14 = vpop.f32.mrb[7].mxu0  ;;  %v912_v16 = vadd.f32 %v911_v12, %v740_v11 }
 0x317   :  { %v843_v15 = vadd.f32 %v842_v51, %v736_v8  ;;  %v914_v18 = vadd.f32 %v913_v14, %v744_v22 }
 0x319   :  { %v1128_v17 = vmax.f32 %v841_v13, %v843_v15 }
 0x31b   :  { %v1129_v19 = vmax.f32 %v1128_v17, %v912_v16 }
 0x31d   :  { %v1130_v20 = vmax.f32 %v1129_v19, %v914_v18 }
 0x335   :  { %v982_v28 = vpop.f32.mrb[6].mxu1  ;;  %v1053_v29 = vpop.f32.mrb[8].mxu0 }
 0x336   :  { %v983_v30 = vadd.f32 %v982_v28, %v748_v24  ;;  %v984_v32 = vpop.f32.mrb[7].mxu1  ;;  %v1055_v33 = vpop.f32.mrb[9].mxu0  ;;  %v1054_v37 = vadd.f32 %v1053_v29, %v756_v31 }
 0x337   :  { %v985_v34 = vadd.f32 %v984_v32, %v752_v26  ;;  %v1056_v39 = vadd.f32 %v1055_v33, %v760_v36 }
 0x338   :  { %v1131_v35 = vmax.f32 %v1130_v20, %v983_v30 }
 0x33a   :  { %v1132_v38 = vmax.f32 %v1131_v35, %v985_v34 }
 0x33c   :  { %v1133_v40 = vmax.f32 %v1132_v38, %v1054_v37 }
 0x33e   :  { %v1134_v41 = vmax.f32 %v1133_v40, %v1056_v39 }
 0x355   :  { %v1124_v43 = vpop.f32.mrb[8].mxu1 }
 0x356   :  { %v1125_v44 = vadd.f32 %v1212_v42, %v1124_v43  ;;  %v1473_v45 = vpop.f32.mrb[9].mxu1 }
 0x358   :  { %v1135_v46 = vmax.f32 %v1134_v41, %v1125_v44 }
 0x35a   :  { %v1136_v47 = vsub.f32 %v841_v13, %v1135_v46  ;;  %v1139_v48 = vsub.f32 %v843_v15, %v1135_v46  ;;  %v1142_v49 = vsub.f32 %v912_v16, %v1135_v46  ;;  %v1145_v50 = vsub.f32 %v914_v18, %v1135_v46 }
 0x35b   :  { %v1148_v52 = vsub.f32 %v983_v30, %v1135_v46  ;;  %v1151_v53 = vsub.f32 %v985_v34, %v1135_v46  ;;  %v1154_v54 = vsub.f32 %v1054_v37, %v1135_v46  ;;  %v1157_v55 = vsub.f32 %v1056_v39, %v1135_v46 }
 0x35c   :  { %v1137_v1 = vmul.f32 1.442695, %v1136_v47  ;;  %v1140_v56 = vmul.f32 1.442695, %v1139_v48  ;;  %v1160_v57 = vsub.f32 %v1125_v44, %v1135_v46  ;;  %v1143_v58 = vmul.f32 1.442695, %v1142_v49 }
 0x35d   :  { %v1146_v59 = vmul.f32 1.442695, %v1145_v50  ;;  %v1149_v60 = vmul.f32 1.442695, %v1148_v52  ;;  %v1152_v61 = vmul.f32 1.442695, %v1151_v53 }
 0x35e   :  { %1782 = vpow2.f32 %v1137_v1  ;;  %v1155_v62 = vmul.f32 1.442695, %v1154_v54  ;;  %v1158_v63 = vmul.f32 1.442695, %v1157_v55  ;;  %v1161_v3 = vmul.f32 1.442695, %v1160_v57 }
 0x35f   :  { %1784 = vpow2.f32 %v1140_v56 }
 0x360   :  { %1786 = vpow2.f32 %v1143_v58 }
 0x361   :  { %1788 = vpow2.f32 %v1146_v59 }
 0x362   :  { %1790 = vpow2.f32 %v1149_v60 }
 0x363   :  { %1792 = vpow2.f32 %v1152_v61 }
 0x364   :  { %1794 = vpow2.f32 %v1155_v62 }
 0x365   :  { %1796 = vpow2.f32 %v1158_v63 }
 0x366   :  { %1798 = vpow2.f32 %v1161_v3 }
 0x368   :  { %v1783_v0 = vpop.eup %1782 }
 0x369   :  { %v1785_v2 = vpop.eup %1784 }
 0x36a   :  { %v1163_v4 = vadd.f32 %v1785_v2, %v1783_v0  ;;  %v1787_v5 = vpop.eup %1786 }
 0x36b   :  { %v1789_v7 = vpop.eup %1788 }
 0x36c   :  { %v1164_v6 = vadd.f32 %v1787_v5, %v1163_v4  ;;  %v1791_v9 = vpop.eup %1790 }
 0x36d   :  { %v1793_v11 = vpop.eup %1792 }
 0x36e   :  { %v1165_v8 = vadd.f32 %v1789_v7, %v1164_v6  ;;  %v1795_v13 = vpop.eup %1794 }
 0x36f   :  { %v1797_v14 = vpop.eup %1796 }
 0x370   :  { %v1166_v10 = vadd.f32 %v1791_v9, %v1165_v8  ;;  %v1799_v22 = vpop.eup %1798 }
 0x372   :  { %v1167_v12 = vadd.f32 %v1793_v11, %v1166_v10 }
 0x374   :  { %v1168_v51 = vadd.f32 %v1795_v13, %v1167_v12 }
 0x376   :  { %v1169_v15 = vadd.f32 %v1797_v14, %v1168_v51 }
 0x378   :  { %v1170_v16 = vadd.f32 %v1799_v22, %v1169_v15 }
 0x37a   :  { %1800 = vrcp.f32 %v1170_v16 }
 0x384   :  { %v1801_v17 = vpop.eup %1800 }
 0x385   :  { %v1172_v18 = vmul.f32 %v1801_v17, %v1170_v16 }
 0x387   :  { %v1173_v19 = vsub.f32 2.0, %v1172_v18 }
 0x389   :  { %v1174_v20 = vmul.f32 %v1801_v17, %v1173_v19 }
 0x38b   :  { %v1191_v21 = vmul.f32 %v1799_v22, %v1174_v20  ;;  %v1175_v23 = vmul.f32 %v1783_v0, %v1174_v20  ;;  %v1177_v24 = vmul.f32 %v1785_v2, %v1174_v20  ;;  %v1179_v25 = vmul.f32 %v1787_v5, %v1174_v20 }
 0x38c   :  { %v1181_v26 = vmul.f32 %v1789_v7, %v1174_v20  ;;  %v1183_v27 = vmul.f32 %v1791_v9, %v1174_v20  ;;  %v1185_v28 = vmul.f32 %v1793_v11, %v1174_v20  ;;  %v1187_v29 = vmul.f32 %v1795_v13, %v1174_v20 }
 0x38d   :  { %1192 = vst [vmem:[#allocation10 + $0x40] sm:$0xff] %v1191_v21  ;;  %1176 = vst [vmem:[#allocation10] sm:$0xff] %v1175_v23  ;;  %v1189_v30 = vmul.f32 %v1797_v14, %v1174_v20 }
 0x38e   :  { %1178 = vst [vmem:[#allocation10 + $0x8] sm:$0xff] %v1177_v24  ;;  %1180 = vst [vmem:[#allocation10 + $0x10] sm:$0xff] %v1179_v25 }
 0x38f   :  { %1182 = vst [vmem:[#allocation10 + $0x18] sm:$0xff] %v1181_v26  ;;  %1184 = vst [vmem:[#allocation10 + $0x20] sm:$0xff] %v1183_v27 }
 0x390   :  { %1186 = vst [vmem:[#allocation10 + $0x28] sm:$0xff] %v1185_v28  ;;  %1188 = vst [vmem:[#allocation10 + $0x30] sm:$0xff] %v1187_v29 }
 0x391   :  { %1190 = vst [vmem:[#allocation10 + $0x38] sm:$0xff] %v1189_v30 }
 0x392   :  { %1901 = shalt.err (!%p1898_p8)
}
 0x393   :  { %s1902_s14 = scalar_lea.hbm %s2098_s7, 1152 }
 0x394   :  { %p1903_p9 = scmp.ne.s32.totalorder %s2098_s7, %s1902_s14  ;;  %p1906_p10 = scmp.lt.u32.totalorder %s1902_s14, %s2098_s7 }
 0x396   :  { %p1908_p11 = pnand %p1906_p10, %p1903_p9 }
 0x398   :  { %1911 = shalt.err (!%p1908_p11)
}
 0x399   :  { %1202 = dma.vmem_to_hbm [thread:$0]  %s1200_s8, 1152, %s2098_s7, [#allocation4]  }
 0x39a   :  { %1918 = dma.done.wait [#allocation4], 1152  }
 0x39b   :  { %1919 = vsyncadd [#allocation4], 4294966144 }
 0x39c   :  { %1206 = vsyncpa [#allocation3], 1 }
 0x39d   :  { %1207 = vsyncpa [#allocation6], 1 }
 0x39e   :  { %1208 = vsyncpa [#allocation9], 1 }
 0x39f   :  { %1209 = vsyncpa [#allocation4], 1 }

</bundles_post_ra>
